<compile_context>
chip_gen: v7x
topology: tpu7x:2x2x1
jax: 0.10.0
libtpu: 0.0.40
codegen_flags: <defaults>
</compile_context>

<pallas_src>
import functools

import jax
import jax.numpy as jnp
from jax.experimental import pallas as pl
from jax.experimental.pallas import tpu as pltpu


def _upsampling_kernel(x_ref, xp_ref, xn_ref, w_ref, b_ref, o_ref, y_ext_ref, *, H):
    # x_ref : (1, TH, W, C)     NHWC input tile
    # xp_ref: (1, 1,  W, C)     halo row above (edge-clamped via index_map)
    # xn_ref: (1, 1,  W, C)     halo row below (edge-clamped via index_map)
    # w_ref : (C, C2)           1x1-conv weight (transposed), C2 = C // 2
    # b_ref : (1, C2)           bias
    # o_ref : (1, TH, 2, W, 2*C2)
    #         o[0, i, a, j, b*C2 + c] == conv(up(x))[2i+a, 2j+b, c]  (tile-local)
    # y_ext_ref: (TH+2, W, C2)  f32 VMEM scratch for the conv outputs (+ halos)
    TH, W, C = x_ref.shape[1], x_ref.shape[2], x_ref.shape[3]
    C2 = w_ref.shape[1]

    w = w_ref[...]
    b = b_ref[...]                                     # (1, C2)

    # --- 1x1 conv FIRST: three dots straight into the C2-wide scratch -------
    # (no C-wide concatenate copy of the tile + halos)
    y_main = jnp.dot(x_ref[0].reshape(TH * W, C), w,
                     preferred_element_type=jnp.float32) + b
    y_ext_ref[pl.ds(1, TH)] = y_main.reshape(TH, W, C2)
    y_ext_ref[0] = jnp.dot(xp_ref[0, 0], w, preferred_element_type=jnp.float32) + b
    y_ext_ref[TH + 1] = jnp.dot(xn_ref[0, 0], w, preferred_element_type=jnp.float32) + b

    y = y_ext_ref[pl.ds(1, TH)]                        # row i
    y_up = y_ext_ref[pl.ds(0, TH)]                     # row i-1 (edge-clamped)
    y_dn = y_ext_ref[pl.ds(2, TH)]                     # row i+1

    # Bottom-edge clamp of the "next row" tap: needed for a ragged last tile
    # (rows past H are padding); a no-op when TH divides H because the
    # halo-below row is already clamped to H-1 by its index_map.
    row = pl.program_id(1) * TH + jax.lax.broadcasted_iota(jnp.int32, (TH, 1, 1), 0)
    y_dn = jnp.where(row >= H - 1, y, y_dn)

    # --- bilinear x2 along H (align_corners=False) ---------------------------
    even_h = 0.25 * y_up + 0.75 * y                    # output rows 2i
    odd_h = 0.75 * y + 0.25 * y_dn                     # output rows 2i+1

    col = jax.lax.broadcasted_iota(jnp.int32, (1, W, 1), 1)

    # --- bilinear x2 along W, per H-phase ------------------------------------
    for a, t in ((0, even_h), (1, odd_h)):
        # Column neighbours: XLU rolls (non-negative shifts only) + edge clamp.
        t_lt = jnp.where(col == 0, t[:, :1, :], pltpu.roll(t, 1, axis=1))
        t_rt = jnp.where(col == W - 1, t[:, W - 1:, :], pltpu.roll(t, W - 1, axis=1))
        even_w = 0.25 * t_lt + 0.75 * t                # output cols 2j
        odd_w = 0.75 * t + 0.25 * t_rt                 # output cols 2j+1
        if C2 % 128 == 0:
            # 128-aligned, unmasked lane-dense stores; no lane-concat temp.
            o_ref[0, :, a, :, :C2] = even_w.astype(o_ref.dtype)
            o_ref[0, :, a, :, C2:] = odd_w.astype(o_ref.dtype)
        else:
            # Small C2: pack the W-phase pair along channels so the stored
            # block stays lane-dense (last dim 2*C2).
            packed = jnp.concatenate([even_w, odd_w], axis=-1)
            o_ref[0, :, a, :, :] = packed.astype(o_ref.dtype)


def _vmem_budget_and_limit():
    """Generation-aware VMEM budget (pipeline buffers + in-kernel temporaries)
    and an explicit scoped-VMEM limit with headroom for CompilerParams."""
    try:
        cap = int(pltpu.get_tpu_info().vmem_capacity_bytes)
    except Exception:       # interpret mode / no TPU visible at trace time
        cap = 64 << 20      # assume the tightest generation (v7x: 64 MiB / TC)
    if cap >= (96 << 20):   # v5e / v6e: 128 MiB physical per core
        return 24 << 20, 96 << 20
    return 16 << 20, 48 << 20       # v7x: 64 MiB per TensorCore


def _tile_bytes(th, W, C, C2, in_isz, out_isz, n_buf=3):
    """Estimated per-grid-step VMEM footprint: pipeline buffers (n_buf deep),
    the conv scratch, and the in-kernel interpolation temporaries."""
    bytes_in = n_buf * (th + 2) * W * C * in_isz             # main tile + 2 halo rows
    bytes_out = n_buf * th * 2 * W * 2 * C2 * out_isz        # (TH, 2, W, 2*C2)
    scratch = (th + 2) * W * C2 * 4                          # y_ext (f32)
    temps = th * W * C * in_isz + 8 * th * W * C2 * 4        # x load + f32 temps
    params = (C + 1) * C2 * 4
    return bytes_in + bytes_out + scratch + temps + params


def _pick_tile_h(N, H, W, C, C2, in_isz, out_isz, budget_bytes):
    """Largest TH (<= H) whose per-step footprint fits the budget.  TH need NOT
    divide H (the ragged last tile is handled in-kernel), so awkward/prime H
    never degrades to TH=1.  Prefer >= 2 total grid steps (pipelining depth /
    v7x megacore) and >= 4 when TH*W stays in the MXU streaming regime."""
    def fits(th):
        return _tile_bytes(th, W, C, C2, in_isz, out_isz) <= budget_bytes

    th = H
    while th > 1 and not fits(th):
        th -= 1

    def steps(t):
        return N * pl.cdiv(H, t)

    while steps(th) < 2 and pl.cdiv(th, 2) >= 8:
        th = pl.cdiv(th, 2)
    while steps(th) < 4 and pl.cdiv(th, 2) * W >= 2048:
        th = pl.cdiv(th, 2)
    return max(int(th), 1)


def _block_spec(shape, index_map, buffers=None):
    """BlockSpec with optional N-deep pipelining (pl.Buffered); falls back to
    default double-buffering if pipeline_mode is unavailable."""
    if buffers is not None:
        try:
            return pl.BlockSpec(shape, index_map, pipeline_mode=pl.Buffered(buffers))
        except Exception:
            pass
    return pl.BlockSpec(shape, index_map)


def upsampling_conv_nhwc(x, w, b, *, tile_h=None):
    """conv1x1(bilinear_up_2x(x)) for NHWC x: (N, H, W, C) -> (N, 2H, 2W, C//2).

    No layout glue: the Pallas output (N, H, 2, W, 2*C2) reshapes row-major
    (free, no HBM pass) to the interleaved NHWC image."""
    N, H, W, C = x.shape
    C2 = w.shape[1]
    budget, vmem_limit = _vmem_budget_and_limit()
    if tile_h is None:
        tile_h = _pick_tile_h(N, H, W, C, C2,
                              x.dtype.itemsize, x.dtype.itemsize, budget)
    TH = max(1, min(int(tile_h), H))
    nh = pl.cdiv(H, TH)
    b2 = b.reshape(1, C2).astype(jnp.float32)
    kernel = functools.partial(_upsampling_kernel, H=H)

    def call(extra_buffers):
        grid_spec = pltpu.PrefetchScalarGridSpec(
            num_scalar_prefetch=0,
            grid=(N, nh),
            in_specs=[
                # main tile (deepest pipelining: big DMA stream)
                _block_spec((1, TH, W, C), lambda n, h: (n, h, 0, 0),
                            buffers=extra_buffers),
                # halo row above (block of 1 along H -> block idx == row idx)
                _block_spec((1, 1, W, C),
                            lambda n, h: (n, jnp.maximum(h * TH - 1, 0), 0, 0)),
                # halo row below (edge-clamped)
                _block_spec((1, 1, W, C),
                            lambda n, h: (n, jnp.minimum((h + 1) * TH, H - 1), 0, 0)),
                _block_spec((C, C2), lambda n, h: (0, 0)),
                _block_spec((1, C2), lambda n, h: (0, 0)),
            ],
            # output is the larger DMA stream -> also request 3-deep buffering
            out_specs=_block_spec((1, TH, 2, W, 2 * C2),
                                  lambda n, h: (n, h, 0, 0, 0),
                                  buffers=extra_buffers),
            scratch_shapes=[pltpu.VMEM((TH + 2, W, C2), jnp.float32)],
        )
        return pl.pallas_call(
            kernel,
            out_shape=jax.ShapeDtypeStruct((N, H, 2, W, 2 * C2), x.dtype),
            grid_spec=grid_spec,
            compiler_params=pltpu.CompilerParams(
                dimension_semantics=("parallel", "parallel"),
                vmem_limit_bytes=vmem_limit),
        )(x, x, x, w, b2)

    try:
        out5 = call(3)        # 3-deep pipelining on the two big DMA streams
    except Exception:
        out5 = call(None)     # fall back to default double-buffering

    # (N, H, 2, W, 2*C2) -> (N, 2H, 2W, C2): pure row-major reshape (free).
    return out5.reshape(N, 2 * H, 2 * W, C2)


def upsampling_forward_nhwc(x_nhwc, r_nhwc, w, b, *, tile_h=None):
    """NHWC end-to-end path (preferred): no transposes at all; only the
    skip-connection concat remains as an XLA op."""
    conv = upsampling_conv_nhwc(x_nhwc, w, b, tile_h=tile_h)
    # TODO(synk): in a fully fused decoder block the channel concat (and the
    # following conv) could consume `conv` and `r` directly instead of
    # materializing the concatenated tensor here.
    return jnp.concatenate([conv, r_nhwc], axis=-1)


def upsampling_forward(x_nchw, r_nchw, w, b, *, tile_h=None):
    """NCHW API matching the PyTorch module: UpSampling(C).forward(x, r).

    x_nchw: (N, C, H, W); r_nchw: (N, Cr, 2H, 2W)
    w: (C, C//2) == torch_weight[:, :, 0, 0].T ; b: (C//2,)
    Returns (N, C//2 + Cr, 2H, 2W) = torch.cat((conv(up(x)), r), 1).

    The transposes + concat below are NCHW API-compat glue (full HBM passes);
    an NHWC end-to-end model should call upsampling_forward_nhwc instead.
    """
    x_nhwc = jnp.transpose(x_nchw, (0, 2, 3, 1))
    conv_nhwc = upsampling_conv_nhwc(x_nhwc, w, b, tile_h=tile_h)
    conv_nchw = jnp.transpose(conv_nhwc, (0, 3, 1, 2))
    return jnp.concatenate([conv_nchw, r_nchw], axis=1)


def _reference(x_nchw, r_nchw, w, b):
    """torch: cat(Conv2d_1x1(interpolate(x, 2, 'bilinear')), r) in f32."""
    N, C, H, W = x_nchw.shape
    C2 = w.shape[1]
    up = jax.image.resize(x_nchw.astype(jnp.float32), (N, C, 2 * H, 2 * W),
                          method="bilinear")
    conv = (jnp.einsum("co,nchw->nohw", w.astype(jnp.float32), up)
            + b.reshape(1, C2, 1, 1).astype(jnp.float32))
    return jnp.concatenate([conv, r_nchw.astype(jnp.float32)], axis=1)


if __name__ == "__main__":
    key = jax.random.PRNGKey(0)
    k1, k2, k3, k4, k5, k6 = jax.random.split(key, 6)

    # --- main test: module-consistent small shapes (batch=2, C=4, spatial=16)
    # NOTE: C=4 / W=16 are far below the (8,128) vreg tile; production should
    # also be validated at real channel counts (C2 >= 128 takes the unmasked
    # direct-store path).
    N, C, H, W = 2, 4, 16, 16
    C2 = C // 2                               # Conv2d(C, C//2, 1, 1)
    x = jax.random.normal(k1, (N, C, H, W), jnp.float32)
    r = jax.random.normal(k2, (N, C2, 2 * H, 2 * W), jnp.float32)
    # Torch weight is (C2, C, 1, 1); we store its 1x1 matrix transposed (C, C2).
    w = jax.random.normal(k3, (C, C2), jnp.float32) * 0.1
    b = jax.random.normal(k4, (C2,), jnp.float32) * 0.1

    out = jax.block_until_ready(upsampling_forward(x, r, w, b))
    assert out.shape == (N, 2 * C2, 2 * H, 2 * W), out.shape
    assert out.dtype == jnp.float32
    ref = _reference(x, r, w, b)
    err = float(jnp.max(jnp.abs(out - ref)))
    assert err < 1e-4, f"NCHW path max abs err {err}"

    # --- NHWC path (zero layout glue) ----------------------------------------
    out_nhwc = jax.block_until_ready(
        upsampling_forward_nhwc(jnp.transpose(x, (0, 2, 3, 1)),
                                jnp.transpose(r, (0, 2, 3, 1)), w, b))
    err = float(jnp.max(jnp.abs(jnp.transpose(out_nhwc, (0, 3, 1, 2)) - ref)))
    assert err < 1e-4, f"NHWC path max abs err {err}"

    # --- ragged H + multi-tile halos (tile does not divide H) ----------------
    N2, H2, W2 = 1, 13, 16
    x2 = jax.random.normal(k5, (N2, C, H2, W2), jnp.float32)
    r2 = jax.random.normal(k6, (N2, C2, 2 * H2, 2 * W2), jnp.float32)
    out2 = jax.block_until_ready(upsampling_forward(x2, r2, w, b, tile_h=8))
    err2 = float(jnp.max(jnp.abs(out2 - _reference(x2, r2, w, b))))
    assert err2 < 1e-4, f"ragged-H max abs err {err2}"

    # --- bf16 path (halves the HBM read stream; MXU-native bf16) -------------
    xb, wb, rb = x.astype(jnp.bfloat16), w.astype(jnp.bfloat16), r.astype(jnp.bfloat16)
    outb = jax.block_until_ready(upsampling_forward(xb, rb, wb, b))
    errb = float(jnp.max(jnp.abs(outb.astype(jnp.float32) - _reference(xb, rb, wb, b))))
    assert errb < 5e-2, f"bf16 path max abs err {errb}"

    print("KERNEL_OK")
</pallas_src>

<mosaic_0001>
module attributes {stable_mosaic.version = 11 : i64} {
  func.func @_upsampling_kernel(%arg0: i32, %arg1: i32, %arg2: memref<1x16x16x4xf32, #tpu.memory_space<vmem>>, %arg3: memref<1x1x16x4xf32, #tpu.memory_space<vmem>>, %arg4: memref<1x1x16x4xf32, #tpu.memory_space<vmem>>, %arg5: memref<4x2xf32, #tpu.memory_space<vmem>>, %arg6: memref<1x2xf32, #tpu.memory_space<vmem>>, %arg7: memref<1x16x2x16x4xf32, #tpu.memory_space<vmem>>, %arg8: memref<18x16x2xf32, #tpu.memory_space<vmem>>) attributes {dimension_semantics = [#tpu.dimension_semantics<parallel>, #tpu.dimension_semantics<parallel>], iteration_bounds = array<i64: 2, 1>, scalar_prefetch = 0 : i64, scratch_operands = 1 : i64, tpu.core_type = #tpu.core_type<tc>, window_params = [{transform_indices = @transform_0, window_bounds = array<i64: 1, 16, 16, 4>}, {transform_indices = @transform_1, window_bounds = array<i64: 1, 1, 16, 4>}, {transform_indices = @transform_2, window_bounds = array<i64: 1, 1, 16, 4>}, {pipeline_mode = #tpu.pipeline_mode<synchronous>, transform_indices = @transform_3, window_bounds = array<i64: 4, 2>}, {pipeline_mode = #tpu.pipeline_mode<synchronous>, transform_indices = @transform_4, window_bounds = array<i64: 1, 2>}, {transform_indices = @transform_5, window_bounds = array<i64: 1, 16, 2, 16, 4>}]} {
    %c0 = arith.constant 0 : index
    %c0_0 = arith.constant 0 : index
    %0 = vector.load %arg5[%c0, %c0_0] : memref<4x2xf32, #tpu.memory_space<vmem>>, vector<4x2xf32>
    %c0_1 = arith.constant 0 : index
    %c0_2 = arith.constant 0 : index
    %1 = vector.load %arg6[%c0_1, %c0_2] : memref<1x2xf32, #tpu.memory_space<vmem>>, vector<1x2xf32>
    %c0_3 = arith.constant 0 : index
    %c0_4 = arith.constant 0 : index
    %c0_5 = arith.constant 0 : index
    %c0_6 = arith.constant 0 : index
    %2 = vector.load %arg2[%c0_3, %c0_4, %c0_5, %c0_6] : memref<1x16x16x4xf32, #tpu.memory_space<vmem>>, vector<1x16x16x4xf32>
    %3 = vector.shape_cast %2 : vector<1x16x16x4xf32> to vector<16x16x4xf32>
    %4 = vector.shape_cast %3 : vector<16x16x4xf32> to vector<256x4xf32>
    %cst = arith.constant dense<0.000000e+00> : vector<256x2xf32>
    %5 = tpu.matmul %4, %0, %cst {dimension_numbers = #tpu.dot_dimension_numbers<[1], [0], [0], [1], [0, 0, 1, 1], [], []>} : vector<256x4xf32>, vector<4x2xf32>, vector<256x2xf32> -> vector<256x2xf32>
    %6 = vector.broadcast %1 : vector<1x2xf32> to vector<256x2xf32>
    %7 = arith.addf %5, %6 : vector<256x2xf32>
    %8 = vector.shape_cast %7 : vector<256x2xf32> to vector<16x16x2xf32>
    %c1 = arith.constant 1 : index
    %c0_7 = arith.constant 0 : index
    %c0_8 = arith.constant 0 : index
    %9 = vector.load %arg8[%c1, %c0_7, %c0_8] : memref<18x16x2xf32, #tpu.memory_space<vmem>>, vector<16x16x2xf32>
    tpu.vector_store %arg8[%c1, %c0_7, %c0_8], %8 {strides = array<i32>} : memref<18x16x2xf32, #tpu.memory_space<vmem>>, vector<16x16x2xf32>,
    %c0_9 = arith.constant 0 : index
    %c0_10 = arith.constant 0 : index
    %c0_11 = arith.constant 0 : index
    %c0_12 = arith.constant 0 : index
    %10 = vector.load %arg3[%c0_9, %c0_10, %c0_11, %c0_12] : memref<1x1x16x4xf32, #tpu.memory_space<vmem>>, vector<1x1x16x4xf32>
    %11 = vector.shape_cast %10 : vector<1x1x16x4xf32> to vector<16x4xf32>
    %cst_13 = arith.constant dense<0.000000e+00> : vector<16x2xf32>
    %12 = tpu.matmul %11, %0, %cst_13 {dimension_numbers = #tpu.dot_dimension_numbers<[1], [0], [0], [1], [0, 0, 1, 1], [], []>} : vector<16x4xf32>, vector<4x2xf32>, vector<16x2xf32> -> vector<16x2xf32>
    %13 = vector.broadcast %1 : vector<1x2xf32> to vector<16x2xf32>
    %14 = arith.addf %12, %13 : vector<16x2xf32>
    %c0_14 = arith.constant 0 : index
    %c0_15 = arith.constant 0 : index
    %c0_16 = arith.constant 0 : index
    %15 = vector.load %arg8[%c0_14, %c0_15, %c0_16] : memref<18x16x2xf32, #tpu.memory_space<vmem>>, vector<1x16x2xf32>
    %16 = vector.shape_cast %15 : vector<1x16x2xf32> to vector<16x2xf32>
    %17 = vector.shape_cast %14 : vector<16x2xf32> to vector<1x16x2xf32>
    tpu.vector_store %arg8[%c0_14, %c0_15, %c0_16], %17 {strides = array<i32>} : memref<18x16x2xf32, #tpu.memory_space<vmem>>, vector<1x16x2xf32>,
    %c0_17 = arith.constant 0 : index
    %c0_18 = arith.constant 0 : index
    %c0_19 = arith.constant 0 : index
    %c0_20 = arith.constant 0 : index
    %18 = vector.load %arg4[%c0_17, %c0_18, %c0_19, %c0_20] : memref<1x1x16x4xf32, #tpu.memory_space<vmem>>, vector<1x1x16x4xf32>
    %19 = vector.shape_cast %18 : vector<1x1x16x4xf32> to vector<16x4xf32>
    %cst_21 = arith.constant dense<0.000000e+00> : vector<16x2xf32>
    %20 = tpu.matmul %19, %0, %cst_21 {dimension_numbers = #tpu.dot_dimension_numbers<[1], [0], [0], [1], [0, 0, 1, 1], [], []>} : vector<16x4xf32>, vector<4x2xf32>, vector<16x2xf32> -> vector<16x2xf32>
    %21 = vector.broadcast %1 : vector<1x2xf32> to vector<16x2xf32>
    %22 = arith.addf %20, %21 : vector<16x2xf32>
    %c17 = arith.constant 17 : index
    %c0_22 = arith.constant 0 : index
    %c0_23 = arith.constant 0 : index
    %23 = vector.load %arg8[%c17, %c0_22, %c0_23] : memref<18x16x2xf32, #tpu.memory_space<vmem>>, vector<1x16x2xf32>
    %24 = vector.shape_cast %23 : vector<1x16x2xf32> to vector<16x2xf32>
    %25 = vector.shape_cast %22 : vector<16x2xf32> to vector<1x16x2xf32>
    tpu.vector_store %arg8[%c17, %c0_22, %c0_23], %25 {strides = array<i32>} : memref<18x16x2xf32, #tpu.memory_space<vmem>>, vector<1x16x2xf32>,
    %c1_24 = arith.constant 1 : index
    %c0_25 = arith.constant 0 : index
    %c0_26 = arith.constant 0 : index
    %26 = vector.load %arg8[%c1_24, %c0_25, %c0_26] : memref<18x16x2xf32, #tpu.memory_space<vmem>>, vector<16x16x2xf32>
    %c0_27 = arith.constant 0 : index
    %c0_28 = arith.constant 0 : index
    %c0_29 = arith.constant 0 : index
    %27 = vector.load %arg8[%c0_27, %c0_28, %c0_29] : memref<18x16x2xf32, #tpu.memory_space<vmem>>, vector<16x16x2xf32>
    %c2 = arith.constant 2 : index
    %c0_30 = arith.constant 0 : index
    %c0_31 = arith.constant 0 : index
    %28 = vector.load %arg8[%c2, %c0_30, %c0_31] : memref<18x16x2xf32, #tpu.memory_space<vmem>>, vector<16x16x2xf32>
    %c16_i32 = arith.constant 16 : i32
    %29 = arith.muli %arg1, %c16_i32 : i32
    %30 = tpu.iota {dimensions = array<i32: 0>} : vector<16x1x1xi32>
    %31 = vector.broadcast %29 : i32 to vector<16x1x1xi32>
    %32 = arith.addi %31, %30 : vector<16x1x1xi32>
    %c15_i32 = arith.constant 15 : i32
    %33 = vector.broadcast %c15_i32 : i32 to vector<16x1x1xi32>
    %34 = arith.cmpi sge, %32, %33 : vector<16x1x1xi32>
    %35 = vector.shape_cast %34 : vector<16x1x1xi1> to vector<16x1x1xi1>
    %36 = vector.broadcast %35 : vector<16x1x1xi1> to vector<16x16x2xi1>
    %37 = arith.select %36, %26, %28 : vector<16x16x2xi1>, vector<16x16x2xf32>
    %cst_32 = arith.constant 2.500000e-01 : f32
    %38 = vector.broadcast %cst_32 : f32 to vector<16x16x2xf32>
    %39 = arith.mulf %38, %27 : vector<16x16x2xf32>
    %cst_33 = arith.constant 7.500000e-01 : f32
    %40 = vector.broadcast %cst_33 : f32 to vector<16x16x2xf32>
    %41 = arith.mulf %40, %26 : vector<16x16x2xf32>
    %42 = arith.addf %39, %41 : vector<16x16x2xf32>
    %cst_34 = arith.constant 7.500000e-01 : f32
    %43 = vector.broadcast %cst_34 : f32 to vector<16x16x2xf32>
    %44 = arith.mulf %43, %26 : vector<16x16x2xf32>
    %cst_35 = arith.constant 2.500000e-01 : f32
    %45 = vector.broadcast %cst_35 : f32 to vector<16x16x2xf32>
    %46 = arith.mulf %45, %37 : vector<16x16x2xf32>
    %47 = arith.addf %44, %46 : vector<16x16x2xf32>
    %48 = tpu.iota {dimensions = array<i32: 1>} : vector<1x16x1xi32>
    %c0_i32 = arith.constant 0 : i32
    %49 = vector.broadcast %c0_i32 : i32 to vector<1x16x1xi32>
    %50 = arith.cmpi eq, %48, %49 : vector<1x16x1xi32>
    %51 = vector.extract_strided_slice %42 {offsets = [0, 0, 0], sizes = [16, 1, 2], strides = [1, 1, 1]} : vector<16x16x2xf32> to vector<16x1x2xf32>
    %c1_i32 = arith.constant 1 : i32
    %52 = tpu.dynamic_rotate %42 by %c1_i32 dim 1 : vector<16x16x2xf32>, i32 -> vector<16x16x2xf32>
    %53 = vector.shape_cast %50 : vector<1x16x1xi1> to vector<1x16x1xi1>
    %54 = vector.broadcast %53 : vector<1x16x1xi1> to vector<16x16x2xi1>
    %55 = vector.shape_cast %51 : vector<16x1x2xf32> to vector<16x1x2xf32>
    %56 = vector.broadcast %55 : vector<16x1x2xf32> to vector<16x16x2xf32>
    %57 = arith.select %54, %56, %52 : vector<16x16x2xi1>, vector<16x16x2xf32>
    %c15_i32_36 = arith.constant 15 : i32
    %58 = vector.broadcast %c15_i32_36 : i32 to vector<1x16x1xi32>
    %59 = arith.cmpi eq, %48, %58 : vector<1x16x1xi32>
    %60 = vector.extract_strided_slice %42 {offsets = [0, 15, 0], sizes = [16, 1, 2], strides = [1, 1, 1]} : vector<16x16x2xf32> to vector<16x1x2xf32>
    %c15_i32_37 = arith.constant 15 : i32
    %61 = tpu.dynamic_rotate %42 by %c15_i32_37 dim 1 : vector<16x16x2xf32>, i32 -> vector<16x16x2xf32>
    %62 = vector.shape_cast %59 : vector<1x16x1xi1> to vector<1x16x1xi1>
    %63 = vector.broadcast %62 : vector<1x16x1xi1> to vector<16x16x2xi1>
    %64 = vector.shape_cast %60 : vector<16x1x2xf32> to vector<16x1x2xf32>
    %65 = vector.broadcast %64 : vector<16x1x2xf32> to vector<16x16x2xf32>
    %66 = arith.select %63, %65, %61 : vector<16x16x2xi1>, vector<16x16x2xf32>
    %cst_38 = arith.constant 2.500000e-01 : f32
    %67 = vector.broadcast %cst_38 : f32 to vector<16x16x2xf32>
    %68 = arith.mulf %67, %57 : vector<16x16x2xf32>
    %cst_39 = arith.constant 7.500000e-01 : f32
    %69 = vector.broadcast %cst_39 : f32 to vector<16x16x2xf32>
    %70 = arith.mulf %69, %42 : vector<16x16x2xf32>
    %71 = arith.addf %68, %70 : vector<16x16x2xf32>
    %cst_40 = arith.constant 7.500000e-01 : f32
    %72 = vector.broadcast %cst_40 : f32 to vector<16x16x2xf32>
    %73 = arith.mulf %72, %42 : vector<16x16x2xf32>
    %cst_41 = arith.constant 2.500000e-01 : f32
    %74 = vector.broadcast %cst_41 : f32 to vector<16x16x2xf32>
    %75 = arith.mulf %74, %66 : vector<16x16x2xf32>
    %76 = arith.addf %73, %75 : vector<16x16x2xf32>
    %77 = tpu.concatenate %71, %76 in 2 : vector<16x16x2xf32>, vector<16x16x2xf32> -> vector<16x16x4xf32>
    %c0_42 = arith.constant 0 : index
    %c0_43 = arith.constant 0 : index
    %c0_44 = arith.constant 0 : index
    %c0_45 = arith.constant 0 : index
    %c0_46 = arith.constant 0 : index
    %78 = vector.load %arg7[%c0_42, %c0_43, %c0_44, %c0_45, %c0_46] : memref<1x16x2x16x4xf32, #tpu.memory_space<vmem>>, vector<1x16x1x16x4xf32>
    %79 = vector.shape_cast %78 : vector<1x16x1x16x4xf32> to vector<16x16x4xf32>
    %80 = vector.shape_cast %77 : vector<16x16x4xf32> to vector<1x16x1x16x4xf32>
    tpu.vector_store %arg7[%c0_42, %c0_43, %c0_44, %c0_45, %c0_46], %80 {strides = array<i32>} : memref<1x16x2x16x4xf32, #tpu.memory_space<vmem>>, vector<1x16x1x16x4xf32>,
    %c0_i32_47 = arith.constant 0 : i32
    %81 = vector.broadcast %c0_i32_47 : i32 to vector<1x16x1xi32>
    %82 = arith.cmpi eq, %48, %81 : vector<1x16x1xi32>
    %83 = vector.extract_strided_slice %47 {offsets = [0, 0, 0], sizes = [16, 1, 2], strides = [1, 1, 1]} : vector<16x16x2xf32> to vector<16x1x2xf32>
    %c1_i32_48 = arith.constant 1 : i32
    %84 = tpu.dynamic_rotate %47 by %c1_i32_48 dim 1 : vector<16x16x2xf32>, i32 -> vector<16x16x2xf32>
    %85 = vector.shape_cast %82 : vector<1x16x1xi1> to vector<1x16x1xi1>
    %86 = vector.broadcast %85 : vector<1x16x1xi1> to vector<16x16x2xi1>
    %87 = vector.shape_cast %83 : vector<16x1x2xf32> to vector<16x1x2xf32>
    %88 = vector.broadcast %87 : vector<16x1x2xf32> to vector<16x16x2xf32>
    %89 = arith.select %86, %88, %84 : vector<16x16x2xi1>, vector<16x16x2xf32>
    %c15_i32_49 = arith.constant 15 : i32
    %90 = vector.broadcast %c15_i32_49 : i32 to vector<1x16x1xi32>
    %91 = arith.cmpi eq, %48, %90 : vector<1x16x1xi32>
    %92 = vector.extract_strided_slice %47 {offsets = [0, 15, 0], sizes = [16, 1, 2], strides = [1, 1, 1]} : vector<16x16x2xf32> to vector<16x1x2xf32>
    %c15_i32_50 = arith.constant 15 : i32
    %93 = tpu.dynamic_rotate %47 by %c15_i32_50 dim 1 : vector<16x16x2xf32>, i32 -> vector<16x16x2xf32>
    %94 = vector.shape_cast %91 : vector<1x16x1xi1> to vector<1x16x1xi1>
    %95 = vector.broadcast %94 : vector<1x16x1xi1> to vector<16x16x2xi1>
    %96 = vector.shape_cast %92 : vector<16x1x2xf32> to vector<16x1x2xf32>
    %97 = vector.broadcast %96 : vector<16x1x2xf32> to vector<16x16x2xf32>
    %98 = arith.select %95, %97, %93 : vector<16x16x2xi1>, vector<16x16x2xf32>
    %cst_51 = arith.constant 2.500000e-01 : f32
    %99 = vector.broadcast %cst_51 : f32 to vector<16x16x2xf32>
    %100 = arith.mulf %99, %89 : vector<16x16x2xf32>
    %cst_52 = arith.constant 7.500000e-01 : f32
    %101 = vector.broadcast %cst_52 : f32 to vector<16x16x2xf32>
    %102 = arith.mulf %101, %47 : vector<16x16x2xf32>
    %103 = arith.addf %100, %102 : vector<16x16x2xf32>
    %cst_53 = arith.constant 7.500000e-01 : f32
    %104 = vector.broadcast %cst_53 : f32 to vector<16x16x2xf32>
    %105 = arith.mulf %104, %47 : vector<16x16x2xf32>
    %cst_54 = arith.constant 2.500000e-01 : f32
    %106 = vector.broadcast %cst_54 : f32 to vector<16x16x2xf32>
    %107 = arith.mulf %106, %98 : vector<16x16x2xf32>
    %108 = arith.addf %105, %107 : vector<16x16x2xf32>
    %109 = tpu.concatenate %103, %108 in 2 : vector<16x16x2xf32>, vector<16x16x2xf32> -> vector<16x16x4xf32>
    %c0_55 = arith.constant 0 : index
    %c0_56 = arith.constant 0 : index
    %c1_57 = arith.constant 1 : index
    %c0_58 = arith.constant 0 : index
    %c0_59 = arith.constant 0 : index
    %110 = vector.load %arg7[%c0_55, %c0_56, %c1_57, %c0_58, %c0_59] : memref<1x16x2x16x4xf32, #tpu.memory_space<vmem>>, vector<1x16x1x16x4xf32>
    %111 = vector.shape_cast %110 : vector<1x16x1x16x4xf32> to vector<16x16x4xf32>
    %112 = vector.shape_cast %109 : vector<16x16x4xf32> to vector<1x16x1x16x4xf32>
    tpu.vector_store %arg7[%c0_55, %c0_56, %c1_57, %c0_58, %c0_59], %112 {strides = array<i32>} : memref<1x16x2x16x4xf32, #tpu.memory_space<vmem>>, vector<1x16x1x16x4xf32>,
    return
  }
  func.func @transform_0(%arg0: i32, %arg1: i32) -> (i32, i32, i32, i32) {
    %c0_i32 = arith.constant 0 : i32
    %c0_i32_0 = arith.constant 0 : i32
    %c0_i32_1 = arith.constant 0 : i32
    return %arg0, %arg1, %c0_i32, %c0_i32_0 : i32, i32, i32, i32
  }
  func.func @transform_1(%arg0: i32, %arg1: i32) -> (i32, i32, i32, i32) {
    %c16_i32 = arith.constant 16 : i32
    %0 = arith.muli %arg1, %c16_i32 : i32
    %c1_i32 = arith.constant 1 : i32
    %1 = arith.subi %0, %c1_i32 : i32
    %c0_i32 = arith.constant 0 : i32
    %2 = arith.maxsi %1, %c0_i32 : i32
    %c0_i32_0 = arith.constant 0 : i32
    %c0_i32_1 = arith.constant 0 : i32
    %c0_i32_2 = arith.constant 0 : i32
    return %arg0, %2, %c0_i32_0, %c0_i32_1 : i32, i32, i32, i32
  }
  func.func @transform_2(%arg0: i32, %arg1: i32) -> (i32, i32, i32, i32) {
    %c1_i32 = arith.constant 1 : i32
    %0 = arith.addi %arg1, %c1_i32 : i32
    %c16_i32 = arith.constant 16 : i32
    %1 = arith.muli %0, %c16_i32 : i32
    %c15_i32 = arith.constant 15 : i32
    %2 = arith.minsi %1, %c15_i32 : i32
    %c0_i32 = arith.constant 0 : i32
    %c0_i32_0 = arith.constant 0 : i32
    %c0_i32_1 = arith.constant 0 : i32
    return %arg0, %2, %c0_i32, %c0_i32_0 : i32, i32, i32, i32
  }
  func.func @transform_3(%arg0: i32, %arg1: i32) -> (i32, i32) {
    %c0_i32 = arith.constant 0 : i32
    %c0_i32_0 = arith.constant 0 : i32
    %c0_i32_1 = arith.constant 0 : i32
    return %c0_i32, %c0_i32_0 : i32, i32
  }
  func.func @transform_4(%arg0: i32, %arg1: i32) -> (i32, i32) {
    %c0_i32 = arith.constant 0 : i32
    %c0_i32_0 = arith.constant 0 : i32
    %c0_i32_1 = arith.constant 0 : i32
    return %c0_i32, %c0_i32_0 : i32, i32
  }
  func.func @transform_5(%arg0: i32, %arg1: i32) -> (i32, i32, i32, i32, i32) {
    %c0_i32 = arith.constant 0 : i32
    %c0_i32_0 = arith.constant 0 : i32
    %c0_i32_1 = arith.constant 0 : i32
    %c0_i32_2 = arith.constant 0 : i32
    return %arg0, %arg1, %c0_i32, %c0_i32_0, %c0_i32_1 : i32, i32, i32, i32, i32
  }
}

</mosaic_0001>

<bundles_post_ra>
// kernel: tpu_custom_call.1
= control target key start
LH: loop header
LB: loop body
LE: loop exit
PB: predicated region body
PF: predicated region fallthrough
CT: control target
= control target key end

     0   :  { %s3093_s18 = smov 0   ;;  %s3095_s19 = smov 0   ;;  %s4842_s0 = inlined_call_operand.vmem [shape: f32[2,16,16,4], index: 0, kind: input, shape index: {}]   ;;  %s4843_s1 = inlined_call_operand.vmem [shape: f32[2,16,16,4], index: 1, kind: input, shape index: {}]   ;;  %s4844_s2 = inlined_call_operand.vmem [shape: f32[2,16,16,4], index: 2, kind: input, shape index: {}]   ;;  %s4845_s3 = inlined_call_operand.vmem [shape: f32[4,2], index: 3, kind: input, shape index: {}]   ;;  %s4846_s4 = inlined_call_operand.vmem [shape: f32[1,2], index: 4, kind: input, shape index: {}]   ;;  %s4847_s5 = inlined_call_operand.vmem [shape: f32[2,16,2,16,4], index: 5, kind: output, shape index: {}]  }
   0x1   :  { %s3097_s20 = smov 0  }
   0x2 LB: > { %s27_s21 = sadd.s32 1, %s3056_s19  ;;  %p2822_p0 = scmp.ge.s32.totalorder %s3060_s20, 1  ;;  %s3060_s20 = sphi %s3097_s20, %s15_s20   ;;  %s3056_s19 = sphi %s3095_s19, %s5125_s19   ;;  %s3052_s18 = sphi %s3093_s18, %s5124_s18  }
   0x3   : > { %p29_p1 = scmp.ge.s32.totalorder %s27_s21, 2  ;;  %p273_p2 = scmp.lt.s32.totalorder %s3060_s20, 3 }
   0x5   : > { %s5127_s21 = smov (%p29_p1, %s27_s21), 0  ;;  %p274_p3 = pnand %p2822_p0, %p273_p2 }
   0x7   : > { %277 = sbr.rel (%p274_p3) target bundleno = 511 (0x1ff), region = 40 }
   0xe   : > { %v3114_v0 = vld [vmem:[%s4845_s3] sm:$0xf]  ;;  %vm530_vm0 = vcmask 1043456   ;;  %p338_p4 = scmp.lt.s32.totalorder %s3052_s18, 1  ;;  %vm433_vm1 = vcmask 31744   ;;  %vm760_vm2 = vcmask 15360   ;;  %v1318_v46 = vlaneseq }
   0xf   : > { %2950 = vmatprep.subr.msk.mxu0 %vm530_vm0, %v3114_v0  ;;  %3010 = vmatprep.subr.msk.mxu1 %vm530_vm0, %v3114_v0  ;;  %v3222_v37 = vld [vmem:[%s4846_s4] ss:$0 sm:$0xff]  ;;  %s3062_s12 = smov 2  }
  0x10   : > { %2951 = vmatpush3.msk.msra.mxu0 %vm530_vm0, %v3114_v0  ;;  %3011 = vmatpush3.msk.msra.mxu1 %vm530_vm0, %v3114_v0  ;;  %s5129_s18 = smov (!%p338_p4, %s3052_s18), 1  ;;  %v3236_v55 = vshrl.u32 %v1318_v46, 7 }
  0x11   : > { %3000 = vmatprep.subr.msk.mxu1 %vm530_vm0, %v3114_v0  ;;  %s3129_s24 = sshll.u32 %s5129_s18, 8  ;;  %s2909_s13 = sshll.u32 %s5129_s18, 9 }
  0x12   : > { %s3135_s27 = scalar_lea.vmem %s4842_s0, %s3129_s24  ;;  %s360_s30 = scalar_lea.vmem %s4843_s1, %s3129_s24  ;;  %vm1355_vm3 = vcmp.lt.s32.totalorder %v3236_v55, 1  ;;  %vm1522_vm4 = vcmp.lt.s32.totalorder %v3236_v55, 7  ;;  %vm1321_vm5 = vcmp.eq.s32.totalorder %v3236_v55, 0 }
  0x13   : > { %v395_v1 = vld [vmem:[%s3135_s27] sm:$0xff]  ;;  %v413_v2 = vld [vmem:[%s3135_s27 + $0x90] sm:$0xff]  ;;  %v396_v3 = vld [vmem:[%s3135_s27 + $0x8] sm:$0xff]  ;;  %s2908_s6 = sadd.s32 240, %s3129_s24  ;;  %s4189_s16 = scalar_lea.vmem %s4847_s5, %s2909_s13 }
  0x14   : > { %2952 = vmatprep.mubr.msk.f32.mxu0 %vm433_vm1, %v395_v1  ;;  %2979 = vmatprep.mubr.msk.f32.mxu1 %vm433_vm1, %v413_v2  ;;  %v414_v4 = vld [vmem:[%s3135_s27 + $0x98] sm:$0xff]  ;;  %v397_v5 = vld [vmem:[%s3135_s27 + $0x10] sm:$0xff]  ;;  %v415_v6 = vld [vmem:[%s3135_s27 + $0xa0] sm:$0xff]  ;;  %s377_s9 = scalar_lea.vmem %s4844_s2, %s2908_s6  ;;  %v3247_v1 = vsub.s32 0, %v3236_v55 }
  0x15   : > { %2953 = vmatmul.mubr.msk.f32.vlgmr.msra.gmra.mrb[0].mxu0 %vm433_vm1, %v396_v3  ;;  %2980 = vmatmul.mubr.msk.f32.vlgmr.msra.gmra.mrb[0].mxu1 %vm433_vm1, %v414_v4  ;;  %v398_v7 = vld [vmem:[%s3135_s27 + $0x18] sm:$0xff]  ;;  %v416_v8 = vld [vmem:[%s3135_s27 + $0xa8] sm:$0xff]  ;;  %v399_v9 = vld [vmem:[%s3135_s27 + $0x20] sm:$0xff]  ;;  %v3250_v3 = vsub.s32 7, %v3236_v55 }
  0x16   : > { %2955 = vmatprep.mubr.msk.f32.mxu0 %vm433_vm1, %v397_v5  ;;  %2982 = vmatprep.mubr.msk.f32.mxu1 %vm433_vm1, %v415_v6  ;;  %v417_v10 = vld [vmem:[%s3135_s27 + $0xb0] sm:$0xff]  ;;  %v400_v11 = vld [vmem:[%s3135_s27 + $0x28] sm:$0xff]  ;;  %v418_v12 = vld [vmem:[%s3135_s27 + $0xb8] sm:$0xff] }
  0x17   : > { %3001 = vmatpush3.msk.msra.mxu1 %vm530_vm0, %v3114_v0  ;;  %v401_v13 = vld [vmem:[%s3135_s27 + $0x30] sm:$0xff]  ;;  %v419_v14 = vld [vmem:[%s3135_s27 + $0xc0] sm:$0xff]  ;;  %v402_v15 = vld [vmem:[%s3135_s27 + $0x38] sm:$0xff] }
  0x18   : > { %3005 = vmatprep.subr.msk.mxu1 %vm530_vm0, %v3114_v0  ;;  %v420_v16 = vld [vmem:[%s3135_s27 + $0xc8] sm:$0xff]  ;;  %v403_v17 = vld [vmem:[%s3135_s27 + $0x40] sm:$0xff]  ;;  %v421_v18 = vld [vmem:[%s3135_s27 + $0xd0] sm:$0xff] }
  0x19   : > { %2956 = vmatmul.mubr.msk.f32.gmra.mrb[2].mxu0 %vm433_vm1, %v398_v7  ;;  %2983 = vmatmul.mubr.msk.f32.gmra.mrb[2].mxu1 %vm433_vm1, %v416_v8  ;;  %v404_v19 = vld [vmem:[%s3135_s27 + $0x48] sm:$0xff]  ;;  %v422_v20 = vld [vmem:[%s3135_s27 + $0xd8] sm:$0xff]  ;;  %v405_v21 = vld [vmem:[%s3135_s27 + $0x50] sm:$0xff]  ;;  %v3257_v8 = vadd.s32 8, %v3236_v55 }
  0x1a   : > { %2958 = vmatprep.mubr.msk.f32.mxu0 %vm433_vm1, %v399_v9  ;;  %2985 = vmatprep.mubr.msk.f32.mxu1 %vm433_vm1, %v417_v10  ;;  %v423_v22 = vld [vmem:[%s3135_s27 + $0xe0] sm:$0xff]  ;;  %v406_v23 = vld [vmem:[%s3135_s27 + $0x58] sm:$0xff]  ;;  %v424_v24 = vld [vmem:[%s3135_s27 + $0xe8] sm:$0xff] }
  0x1b   : > { %v407_v25 = vld [vmem:[%s3135_s27 + $0x60] sm:$0xff]  ;;  %v425_v26 = vld [vmem:[%s3135_s27 + $0xf0] sm:$0xff]  ;;  %v408_v27 = vld [vmem:[%s3135_s27 + $0x68] sm:$0xff]  ;;  %vm1489_vm6 = vcmp.eq.s32.totalorder %v3257_v8, 15 }
  0x1c   : > { %v426_v28 = vld [vmem:[%s3135_s27 + $0xf8] sm:$0xff]  ;;  %v409_v29 = vld [vmem:[%s3135_s27 + $0x70] sm:$0xff]  ;;  %v793_v30 = vld [vmem:[%s360_s30] sm:$0xff] }
  0x1d   : > { %2959 = vmatmul.mubr.msk.f32.gmra.mrb[4].mxu0 %vm433_vm1, %v400_v11  ;;  %2986 = vmatmul.mubr.msk.f32.gmra.mrb[4].mxu1 %vm433_vm1, %v418_v12  ;;  %v794_v31 = vld [vmem:[%s360_s30 + $0x8] sm:$0xff]  ;;  %v410_v32 = vld [vmem:[%s3135_s27 + $0x78] sm:$0xff]  ;;  %v411_v33 = vld [vmem:[%s3135_s27 + $0x80] sm:$0xff] }
  0x1e   : > { %2961 = vmatprep.mubr.msk.f32.mxu0 %vm433_vm1, %v401_v13  ;;  %2988 = vmatprep.mubr.msk.f32.mxu1 %vm433_vm1, %v419_v14  ;;  %v412_v34 = vld [vmem:[%s3135_s27 + $0x88] sm:$0xff]  ;;  %v878_v35 = vld [vmem:[%s377_s9] sm:$0xff] }
  0x1f   : > { %v879_v36 = vld [vmem:[%s377_s9 + $0x8] sm:$0xff] }
  0x21   : > { %2962 = vmatmul.mubr.msk.f32.gmra.mrb[6].mxu0 %vm433_vm1, %v402_v15  ;;  %2989 = vmatmul.mubr.msk.f32.gmra.mrb[6].mxu1 %vm433_vm1, %v420_v16 }
  0x22   : > { %2964 = vmatprep.mubr.msk.f32.mxu0 %vm433_vm1, %v403_v17  ;;  %2991 = vmatprep.mubr.msk.f32.mxu1 %vm433_vm1, %v421_v18 }
  0x25   : > { %2965 = vmatmul.mubr.msk.f32.gmra.mrb[8].mxu0 %vm433_vm1, %v404_v19  ;;  %2992 = vmatmul.mubr.msk.f32.gmra.mrb[8].mxu1 %vm433_vm1, %v422_v20 }
  0x26   : > { %2967 = vmatprep.mubr.msk.f32.mxu0 %vm433_vm1, %v405_v21  ;;  %2994 = vmatprep.mubr.msk.f32.mxu1 %vm433_vm1, %v423_v22 }
  0x29   : > { %2968 = vmatmul.mubr.msk.f32.gmra.mrb[10].mxu0 %vm433_vm1, %v406_v23  ;;  %2995 = vmatmul.mubr.msk.f32.gmra.mrb[10].mxu1 %vm433_vm1, %v424_v24 }
  0x2a   : > { %2970 = vmatprep.mubr.msk.f32.mxu0 %vm433_vm1, %v407_v25  ;;  %2997 = vmatprep.mubr.msk.f32.mxu1 %vm433_vm1, %v425_v26 }
  0x2d   : > { %2971 = vmatmul.mubr.msk.f32.gmra.mrb[12].mxu0 %vm433_vm1, %v408_v27  ;;  %2998 = vmatmul.mubr.msk.f32.gmra.mrb[12].mxu1 %vm433_vm1, %v426_v28 }
  0x2e   : > { %2973 = vmatprep.mubr.msk.f32.mxu0 %vm433_vm1, %v409_v29  ;;  %3002 = vmatprep.mubr.msk.f32.mxu1 %vm433_vm1, %v793_v30 }
  0x31   : > { %2974 = vmatmul.mubr.msk.f32.gmra.mrb[14].mxu0 %vm433_vm1, %v410_v32  ;;  %3003 = vmatmul.mubr.msk.f32.vlgmr.msra.gmra.mrb[14].mxu1 %vm433_vm1, %v794_v31 }
  0x32   : > { %2976 = vmatprep.mubr.msk.f32.mxu0 %vm433_vm1, %v411_v33  ;;  %3006 = vmatpush3.msk.msra.mxu1 %vm530_vm0, %v3114_v0 }
  0x33   : > { %3007 = vmatprep.mubr.msk.f32.mxu1 %vm433_vm1, %v878_v35 }
  0x35   : > { %2977 = vmatmul.mubr.msk.f32.gmra.mrb[16].mxu0 %vm433_vm1, %v412_v34  ;;  %3008 = vmatmul.mubr.msk.f32.vlgmr.msra.gmra.mrb[16].mxu1 %vm433_vm1, %v879_v36 }
  0xe8   : > { %v2954_v38 = vpop.f32.mrb[0].mxu0  ;;  %v2981_v39 = vpop.f32.mrb[0].mxu1 }
  0xe9   : > { %v606_v40 = vadd.f32 %v2954_v38, %v3222_v37  ;;  %v696_v41 = vadd.f32 %v2981_v39, %v3222_v37  ;;  %v600_v42 = vpop.f32.mrb[1].mxu0  ;;  %v690_v43 = vpop.f32.mrb[1].mxu1 }
  0xea   : > { %v601_v44 = vadd.f32 %v3222_v37, %v600_v42  ;;  %v691_v45 = vadd.f32 %v3222_v37, %v690_v43 }
  0xeb   : > { %762 = vst.msk [vmem:[#allocation2 + $0x18] sm:$0xff] %vm760_vm2, %v606_v40  ;;  %780 = vst.msk [vmem:[#allocation2 + $0xa8] sm:$0xff] %vm760_vm2, %v696_v41 }
  0xec   : > { %761 = vst.msk [vmem:[#allocation2 + $0x10] sm:$0xff] %vm760_vm2, %v601_v44  ;;  %779 = vst.msk [vmem:[#allocation2 + $0xa0] sm:$0xff] %vm760_vm2, %v691_v45  ;;  %v2957_v47 = vpop.f32.mrb[2].mxu0  ;;  %v2984_v48 = vpop.f32.mrb[2].mxu1 }
  0xed   : > { %v616_v49 = vadd.f32 %v2957_v47, %v3222_v37  ;;  %v706_v50 = vadd.f32 %v2984_v48, %v3222_v37  ;;  %v610_v51 = vpop.f32.mrb[3].mxu0  ;;  %v700_v52 = vpop.f32.mrb[3].mxu1 }
  0xee   : > { %v611_v53 = vadd.f32 %v3222_v37, %v610_v51  ;;  %v701_v54 = vadd.f32 %v3222_v37, %v700_v52 }
  0xef   : > { %764 = vst.msk [vmem:[#allocation2 + $0x28] sm:$0xff] %vm760_vm2, %v616_v49  ;;  %782 = vst.msk [vmem:[#allocation2 + $0xb8] sm:$0xff] %vm760_vm2, %v706_v50 }
  0xf0   : > { %763 = vst.msk [vmem:[#allocation2 + $0x20] sm:$0xff] %vm760_vm2, %v611_v53  ;;  %781 = vst.msk [vmem:[#allocation2 + $0xb0] sm:$0xff] %vm760_vm2, %v701_v54  ;;  %v2960_v56 = vpop.f32.mrb[4].mxu0  ;;  %v2987_v57 = vpop.f32.mrb[4].mxu1 }
  0xf1   : > { %v626_v58 = vadd.f32 %v2960_v56, %v3222_v37  ;;  %v716_v59 = vadd.f32 %v2987_v57, %v3222_v37  ;;  %v620_v60 = vpop.f32.mrb[5].mxu0  ;;  %v710_v61 = vpop.f32.mrb[5].mxu1 }
  0xf2   : > { %v621_v62 = vadd.f32 %v3222_v37, %v620_v60  ;;  %v711_v63 = vadd.f32 %v3222_v37, %v710_v61  ;;  %v1017_v0 = vld [vmem:[#allocation2 + $0xa8] sm:$0xff]  ;;  %v999_v2 = vld [vmem:[#allocation2 + $0x18] sm:$0xff] }
  0xf3   : > { %766 = vst.msk [vmem:[#allocation2 + $0x38] sm:$0xff] %vm760_vm2, %v626_v58  ;;  %784 = vst.msk [vmem:[#allocation2 + $0xc8] sm:$0xff] %vm760_vm2, %v716_v59  ;;  %v1016_v4 = vld [vmem:[#allocation2 + $0xa0] sm:$0xff]  ;;  %v1179_v5 = vmul.f32 0.25, %v1017_v0  ;;  %v998_v6 = vld [vmem:[#allocation2 + $0x10] sm:$0xff]  ;;  %v1161_v7 = vmul.f32 0.25, %v999_v2 }
  0xf4   : > { %v1046_v9 = vld [vmem:[#allocation2 + $0xa8] sm:$0xff]  ;;  %765 = vst.msk [vmem:[#allocation2 + $0x30] sm:$0xff] %vm760_vm2, %v621_v62  ;;  %783 = vst.msk [vmem:[#allocation2 + $0xc0] sm:$0xff] %vm760_vm2, %v711_v63  ;;  %v2963_v10 = vpop.f32.mrb[6].mxu0  ;;  %v2990_v11 = vpop.f32.mrb[6].mxu1  ;;  %v1178_v12 = vmul.f32 0.25, %v1016_v4 }
  0xf5   : > { %v1160_v13 = vmul.f32 0.25, %v998_v6  ;;  %v3262_v14 = vmul.f32 0.75, %v999_v2  ;;  %v3264_v15 = vmul.f32 0.75, %v1017_v0  ;;  %v636_v16 = vadd.f32 %v2963_v10, %v3222_v37  ;;  %v630_v17 = vpop.f32.mrb[7].mxu0  ;;  %v720_v19 = vpop.f32.mrb[7].mxu1  ;;  %v1045_v22 = vld [vmem:[#allocation2 + $0xa0] sm:$0xff] }
  0xf6   : > { %v726_v18 = vadd.f32 %v2990_v11, %v3222_v37  ;;  %v3268_v20 = vmul.f32 0.75, %v998_v6  ;;  %v3270_v21 = vmul.f32 0.75, %v1016_v4  ;;  %v631_v23 = vadd.f32 %v3222_v37, %v630_v17  ;;  %v985_v25 = vld [vmem:[#allocation2 + $0xb8] sm:$0xff]  ;;  %v967_v26 = vld [vmem:[#allocation2 + $0x28] sm:$0xff] }
  0xf7   : > { %v721_v24 = vadd.f32 %v3222_v37, %v720_v19  ;;  %v3274_v27 = vmul.f32 0.25, %v1045_v22  ;;  %v3276_v28 = vmul.f32 0.25, %v1046_v9  ;;  %768 = vst.msk [vmem:[#allocation2 + $0x48] sm:$0xff] %vm760_vm2, %v636_v16  ;;  %v984_v29 = vld [vmem:[#allocation2 + $0xb0] sm:$0xff]  ;;  %v3280_v30 = vmul.f32 0.75, %v985_v25  ;;  %v966_v31 = vld [vmem:[#allocation2 + $0x20] sm:$0xff] }
  0xf8   : > { %786 = vst.msk [vmem:[#allocation2 + $0xd8] sm:$0xff] %vm760_vm2, %v726_v18  ;;  %v3282_v32 = vmul.f32 0.75, %v967_v26  ;;  %v3284_v33 = vmul.f32 0.25, %v967_v26  ;;  %v3286_v34 = vmul.f32 0.25, %v985_v25  ;;  %767 = vst.msk [vmem:[#allocation2 + $0x40] sm:$0xff] %vm760_vm2, %v631_v23  ;;  %v2993_v35 = vpop.f32.mrb[8].mxu1 }
  0xf9   : > { %785 = vst.msk [vmem:[#allocation2 + $0xd0] sm:$0xff] %vm760_vm2, %v721_v24  ;;  %v2966_v36 = vpop.f32.mrb[8].mxu0  ;;  %v3290_v38 = vmul.f32 0.75, %v984_v29  ;;  %v3292_v39 = vmul.f32 0.75, %v966_v31  ;;  %v3294_v40 = vmul.f32 0.25, %v966_v31  ;;  %v3296_v41 = vmul.f32 0.25, %v984_v29 }
  0xfa   : > { %v736_v42 = vadd.f32 %v2993_v35, %v3222_v37  ;;  %v730_v43 = vpop.f32.mrb[9].mxu1  ;;  %v646_v44 = vadd.f32 %v2966_v36, %v3222_v37  ;;  %v640_v45 = vpop.f32.mrb[9].mxu0  ;;  %v3301_v46 = vadd.f32 %v3280_v30, %v1179_v5  ;;  %v3304_v47 = vadd.f32 %v3282_v32, %v1161_v7 }
  0xfb   : > { %v731_v48 = vadd.f32 %v3222_v37, %v730_v43  ;;  %v641_v49 = vadd.f32 %v3222_v37, %v640_v45  ;;  %v3309_v50 = vadd.f32 %v3290_v38, %v1178_v12  ;;  %v3312_v51 = vadd.f32 %v3292_v39, %v1160_v13 }
  0xfc   : > { %788 = vst.msk [vmem:[#allocation2 + $0xe8] sm:$0xff] %vm760_vm2, %v736_v42  ;;  %770 = vst.msk [vmem:[#allocation2 + $0x58] sm:$0xff] %vm760_vm2, %v646_v44  ;;  %v4849_v52 = vrot.slane %v3301_v46, 7  ;;  %v1516_v53 = vrot.slane %v3301_v46, 1  ;;  %v4851_v54 = vrot.slane %v3304_v47, 7  ;;  %v1507_v56 = vrot.slane %v3304_v47, 1 }
  0xfd   : > { %787 = vst.msk [vmem:[#allocation2 + $0xe0] sm:$0xff] %vm760_vm2, %v731_v48  ;;  %v2996_v57 = vpop.f32.mrb[10].mxu1  ;;  %769 = vst.msk [vmem:[#allocation2 + $0x50] sm:$0xff] %vm760_vm2, %v641_v49  ;;  %v2969_v58 = vpop.f32.mrb[10].mxu0  ;;  %v1500_v59 = vrot.slane %v3309_v50, 1  ;;  %v1707_v60 = vmul.f32 0.75, %v3309_v50  ;;  %v1435_v62 = vrot.slane %v3309_v50, %v3247_v1  ;;  %v1399_v23 = vrot.slane %v3312_v51, %v3247_v1 }
  0xfe   : > { %v4848_v61 = vrot.slane %v3309_v50, 7  ;;  %v746_v63 = vadd.f32 %v2996_v57, %v3222_v37  ;;  %v740_v0 = vpop.f32.mrb[11].mxu1  ;;  %v656_v2 = vadd.f32 %v2969_v58, %v3222_v37  ;;  %v650_v4 = vpop.f32.mrb[11].mxu0  ;;  %v1491_v5 = vrot.slane %v3312_v51, 1 }
  0xff   : > { %v1689_v6 = vmul.f32 0.75, %v3312_v51  ;;  %v741_v7 = vadd.f32 %v3222_v37, %v740_v0  ;;  %v1533_v9 = vsel %vm1522_vm4, %v1500_v59, %v1516_v53  ;;  %v651_v11 = vadd.f32 %v3222_v37, %v650_v4 }
 0x100   : > { %v1382_v10 = vsel %vm1355_vm3, %v4849_v52, %v4848_v61  ;;  %790 = vst.msk [vmem:[#allocation2 + $0xf8] sm:$0xff] %vm760_vm2, %v746_v63  ;;  %772 = vst.msk [vmem:[#allocation2 + $0x68] sm:$0xff] %vm760_vm2, %v656_v2  ;;  %v1771_v12 = vmul.f32 0.25, %v1533_v9  ;;  %v1524_v16 = vsel %vm1522_vm4, %v1491_v5, %v1507_v56  ;;  %v4850_v17 = vrot.slane %v3312_v51, 7  ;;  %v2999_v18 = vpop.f32.mrb[12].mxu1  ;;  %v2972_v24 = vpop.f32.mrb[12].mxu0 }
 0x101   : > { %v1476_v13 = vsel %vm1321_vm5, %v1435_v62, %v1382_v10  ;;  %789 = vst.msk [vmem:[#allocation2 + $0xf0] sm:$0xff] %vm760_vm2, %v741_v7  ;;  %771 = vst.msk [vmem:[#allocation2 + $0x60] sm:$0xff] %vm760_vm2, %v651_v11  ;;  %v1753_v22 = vmul.f32 0.25, %v1524_v16  ;;  %v1540_v25 = vsel %vm1522_vm4, %v1507_v56, %v1491_v5  ;;  %v756_v26 = vadd.f32 %v2999_v18, %v3222_v37  ;;  %v750_v29 = vpop.f32.mrb[13].mxu1  ;;  %v660_v42 = vpop.f32.mrb[13].mxu0  ;;  %v970_v52 = vld [vmem:[#allocation2 + $0x40] sm:$0xff] }
 0x102   : > { %v1675_v19 = vmul.f32 0.25, %v1476_v13  ;;  %v1803_v31 = vadd.f32 %v1771_v12, %v1707_v60  ;;  %v1373_v35 = vsel %vm1355_vm3, %v4851_v54, %v4850_v17  ;;  %v666_v36 = vadd.f32 %v2972_v24, %v3222_v37  ;;  %v971_v17 = vld [vmem:[#allocation2 + $0x48] sm:$0xff] }
 0x103   : > { %v751_v43 = vadd.f32 %v3222_v37, %v750_v29  ;;  %v1785_v45 = vadd.f32 %v1753_v22, %v1689_v6  ;;  %v1458_v48 = vsel %vm1321_vm5, %v1399_v23, %v1373_v35  ;;  %792 = vst.msk [vmem:[#allocation2 + $0x108] sm:$0xff] %vm760_vm2, %v756_v26  ;;  %v661_v56 = vadd.f32 %v3222_v37, %v660_v42 }
 0x104   : > { %v3364_v44 = vadd.f32 %v1707_v60, %v1675_v19  ;;  %1887 = vrot.lane.b32.xlu0 %v1803_v31, %s3062_s12  ;;  %v1657_v49 = vmul.f32 0.25, %v1458_v48  ;;  %774 = vst.msk [vmem:[#allocation2 + $0x78] sm:$0xff] %vm760_vm2, %v666_v36  ;;  %v1566_v57 = vrot.slane %v3304_v47, %v3250_v3  ;;  %v3375_v58 = vmul.f32 0.75, %v3304_v47  ;;  %v3004_v60 = vpop.f32.mrb[14].mxu1  ;;  %v2975_v62 = vpop.f32.mrb[14].mxu0  ;;  %v969_v48 = vld [vmem:[#allocation2 + $0x38] sm:$0xff] }
 0x105   : > { %791 = vst.msk [vmem:[#allocation2 + $0x100] sm:$0xff] %vm760_vm2, %v751_v43  ;;  %1851 = vrot.lane.b32.xlu1 %v1785_v45, %s3062_s12  ;;  %v3381_v63 = vadd.f32 %v3294_v40, %v3268_v20  ;;  %v3385_v0 = vadd.f32 %v3284_v33, %v3262_v14  ;;  %v1549_v2 = vsel %vm1522_vm4, %v1516_v53, %v1500_v59  ;;  %773 = vst.msk [vmem:[#allocation2 + $0x70] sm:$0xff] %vm760_vm2, %v661_v56  ;;  %v867_v9 = vpop.f32.mrb[15].mxu1  ;;  %v670_v11 = vpop.f32.mrb[15].mxu0  ;;  %v968_v45 = vld [vmem:[#allocation2 + $0x30] sm:$0xff] }
 0x106   : > { %v1602_v4 = vrot.slane %v3301_v46, %v3250_v3  ;;  %v3391_v5 = vadd.f32 %v1689_v6, %v1657_v49  ;;  %v873_v7 = vadd.f32 %v3004_v60, %v3222_v37  ;;  %v676_v10 = vadd.f32 %v2975_v62, %v3222_v37 }
 0x107   : > { %v1626_v12 = vsel %vm1489_vm6, %v1566_v57, %v1540_v25  ;;  %v868_v13 = vadd.f32 %v3222_v37, %v867_v9  ;;  %v671_v53 = vadd.f32 %v3222_v37, %v670_v11  ;;  %v2167_v16 = vrot.slane %v3381_v63, 1 }
 0x108   : > { %v1754_v59 = vmul.f32 0.25, %v1626_v12  ;;  %877 = vst.msk [vmem:[#allocation2 + $0x8] sm:$0xff] %vm760_vm2, %v873_v7  ;;  %776 = vst.msk [vmem:[#allocation2 + $0x88] sm:$0xff] %vm760_vm2, %v676_v10  ;;  %v2183_v6 = vrot.slane %v3385_v0, 1  ;;  %v3405_v18 = vmul.f32 0.75, %v3381_v63  ;;  %v1644_v19 = vsel %vm1489_vm6, %v1602_v4, %v1549_v2  ;;  %v2978_v24 = vpop.f32.mrb[16].mxu0 }
 0x109   : > { %v3410_v22 = vmul.f32 0.75, %v3301_v46  ;;  %876 = vst.msk [vmem:[#allocation2] sm:$0xff] %vm760_vm2, %v868_v13  ;;  %775 = vst.msk [vmem:[#allocation2 + $0x80] sm:$0xff] %vm760_vm2, %v671_v53  ;;  %v1772_v25 = vmul.f32 0.25, %v1644_v19  ;;  %v3417_v26 = vadd.f32 %v3296_v41, %v3270_v21  ;;  %v3421_v29 = vadd.f32 %v3286_v34, %v3264_v15  ;;  %v680_v36 = vpop.f32.mrb[17].mxu0  ;;  %v986_v12 = vld [vmem:[#allocation2 + $0xc0] sm:$0xff] }
 0x10a   : > { %v1786_v23 = vadd.f32 %v1754_v59, %v3375_v58  ;;  %v2199_v31 = vsel %vm1522_vm4, %v2167_v16, %v2183_v6  ;;  %v686_v35 = vadd.f32 %v2978_v24, %v3222_v37  ;;  %v2215_v42 = vsel %vm1522_vm4, %v2183_v6, %v2167_v16  ;;  %v987_v13 = vld [vmem:[#allocation2 + $0xc8] sm:$0xff] }
 0x10b   : > { %v2234_v43 = vrot.slane %v3385_v0, %v3250_v3  ;;  %v2423_v49 = vmul.f32 0.25, %v2199_v31  ;;  %v681_v56 = vadd.f32 %v3222_v37, %v680_v36  ;;  %v1804_v57 = vadd.f32 %v1772_v25, %v3410_v22 }
 0x10c   : > { %1853 = vrot.lane.b32.xlu1 %v1786_v23, %s3062_s12  ;;  %v2176_v60 = vrot.slane %v3417_v26, 1  ;;  %778 = vst.msk [vmem:[#allocation2 + $0x98] sm:$0xff] %vm760_vm2, %v686_v35  ;;  %v2192_v62 = vrot.slane %v3421_v29, 1  ;;  %v3437_v2 = vmul.f32 0.75, %v3417_v26  ;;  %v3442_v7 = vmul.f32 0.75, %v3385_v0 }
 0x10d   : > { %v2296_v4 = vsel %vm1489_vm6, %v2234_v43, %v2215_v42  ;;  %v2455_v9 = vadd.f32 %v2423_v49, %v3405_v18  ;;  %777 = vst.msk [vmem:[#allocation2 + $0x90] sm:$0xff] %vm760_vm2, %v681_v56  ;;  %v3446_v10 = vmul.f32 0.75, %v968_v45  ;;  %v3448_v11 = vmul.f32 0.75, %v969_v48 }
 0x10e   : > { %v2424_v37 = vmul.f32 0.25, %v2296_v4  ;;  %v2208_v53 = vsel %vm1522_vm4, %v2176_v60, %v2192_v62  ;;  %v2224_v59 = vsel %vm1522_vm4, %v2192_v62, %v2176_v60  ;;  %v2270_v16 = vrot.slane %v3421_v29, %v3250_v3 }
 0x10f   : > { %v3457_v6 = vmul.f32 0.75, %v3421_v29  ;;  %2519 = vrot.lane.b32.xlu0 %v2455_v9, %s3062_s12  ;;  %v2441_v19 = vmul.f32 0.25, %v2208_v53  ;;  %v3464_v24 = vadd.f32 %v3294_v40, %v3446_v10  ;;  %v3468_v25 = vadd.f32 %v3284_v33, %v3448_v11 }
 0x110   : > { %1889 = vrot.lane.b32.xlu1 %v1804_v57, %s3062_s12  ;;  %v2456_v23 = vadd.f32 %v2424_v37, %v3442_v7  ;;  %v2314_v31 = vsel %vm1489_vm6, %v2270_v16, %v2224_v59  ;;  %v3472_v35 = vmul.f32 0.75, %v986_v12  ;;  %v3474_v36 = vmul.f32 0.75, %v987_v13 }
 0x111   : > { %4954 = vst [vmem:[#allocation3_spill] sm:$0xff] %v3457_v6  ;;  %v3476_v42 = vmul.f32 0.25, %v968_v45  ;;  %v2473_v43 = vadd.f32 %v2441_v19, %v3437_v2  ;;  %v1492_v49 = vrot.slane %v3464_v24, 1  ;;  %v1508_v40 = vrot.slane %v3468_v25, 1 }
 0x112   : > { %v3482_v56 = vmul.f32 0.75, %v3464_v24  ;;  %v2442_v33 = vmul.f32 0.25, %v2314_v31  ;;  %v3486_v57 = vadd.f32 %v3296_v41, %v3472_v35  ;;  %v3490_v60 = vadd.f32 %v3286_v34, %v3474_v36 }
 0x113   : > { %v1570_v45 = vrot.slane %v3468_v25, %v3250_v3  ;;  %2555 = vrot.lane.b32.xlu0 %v2473_v43, %s3062_s12  ;;  %v1525_v62 = vsel %vm1522_vm4, %v1492_v49, %v1508_v40  ;;  %v1541_v4 = vsel %vm1522_vm4, %v1508_v40, %v1492_v49  ;;  %v3501_v41 = vmul.f32 0.75, %v3468_v25 }
 0x114   : > { %4955 = vst [vmem:[#allocation4_spill] sm:$0xff] %v3482_v56  ;;  %2521 = vrot.lane.b32.xlu1 %v2456_v23, %s3062_s12  ;;  %v1257_v9 = vmul.f32 0.25, %v969_v48  ;;  %v1014_v37 = vld [vmem:[#allocation2 + $0x90] sm:$0xff]  ;;  %v1755_v34 = vmul.f32 0.25, %v1525_v62  ;;  %v2474_v53 = vadd.f32 %v2442_v33, %v3457_v6  ;;  %v1501_v59 = vrot.slane %v3486_v57, 1 }
 0x115   : > { %4956 = vst [vmem:[#allocation5_spill] sm:$0xff] %v3501_v41  ;;  %v1517_v16 = vrot.slane %v3490_v60, 1  ;;  %v3506_v19 = vmul.f32 0.25, %v1014_v37  ;;  %v3509_v23 = vmul.f32 0.75, %v3486_v57  ;;  %v1628_v31 = vsel %vm1489_vm6, %v1570_v45, %v1541_v4 }
 0x116   : > { %v3515_v43 = vadd.f32 %v3476_v42, %v3292_v39  ;;  %v1787_v48 = vadd.f32 %v1755_v34, %v3482_v56  ;;  %v1756_v40 = vmul.f32 0.25, %v1628_v31  ;;  %v3521_v33 = vadd.f32 %v1257_v9, %v3282_v32 }
 0x117   : > { %4957 = vst [vmem:[#allocation6_spill] sm:$0xff] %v3509_v23  ;;  %v1534_v49 = vsel %vm1522_vm4, %v1501_v59, %v1517_v16  ;;  %v3525_v62 = vadd.f32 %v3270_v21, %v3506_v19  ;;  %v1550_v32 = vsel %vm1522_vm4, %v1517_v16, %v1501_v59  ;;  %v1606_v21 = vrot.slane %v3490_v60, %v3250_v3 }
 0x118   : > { %4958 = vst [vmem:[#allocation7_spill] sm:$0xff] %v3521_v33  ;;  %2557 = vrot.lane.b32.xlu1 %v2474_v53, %s3062_s12  ;;  %v1773_v45 = vmul.f32 0.25, %v1534_v49  ;;  %v2168_v4 = vrot.slane %v3515_v43, 1  ;;  %v3530_v39 = vmul.f32 0.75, %v3515_v43  ;;  %1855 = vrot.lane.b32.xlu0 %v1787_v48, %s3062_s12  ;;  %v1788_v37 = vadd.f32 %v1756_v40, %v3501_v41  ;;  %v989_v41 = vld [vmem:[#allocation2 + $0xd8] sm:$0xff] }
 0x119   : > { %v2184_v34 = vrot.slane %v3521_v33, 1  ;;  %v3541_v31 = vmul.f32 0.75, %v3490_v60  ;;  %v1274_v49 = vmul.f32 0.25, %v986_v12  ;;  %v1275_v61 = vmul.f32 0.25, %v987_v13 }
 0x11a   : > { %4959 = vst [vmem:[#allocation8_spill] sm:$0xff] %v3530_v39  ;;  %v1805_v53 = vadd.f32 %v1773_v45, %v3509_v23  ;;  %v1646_v40 = vsel %vm1489_vm6, %v1606_v21, %v1550_v32  ;;  %v2238_v16 = vrot.slane %v3521_v33, %v3250_v3  ;;  %v3566_v21 = vmul.f32 0.75, %v971_v17  ;;  %v988_v23 = vld [vmem:[#allocation2 + $0xd0] sm:$0xff] }
 0x11b   : > { %4960 = vst [vmem:[#allocation9_spill] sm:$0xff] %v3541_v31  ;;  %v2200_v48 = vsel %vm1522_vm4, %v2168_v4, %v2184_v34  ;;  %v2216_v59 = vsel %vm1522_vm4, %v2184_v34, %v2168_v4  ;;  %v1774_v54 = vmul.f32 0.25, %v1646_v40  ;;  %v3553_v12 = vadd.f32 %v1274_v49, %v3290_v38 }
 0x11c   : > { %1857 = vrot.lane.b32.xlu1 %v1788_v37, %s3062_s12  ;;  %v2425_v45 = vmul.f32 0.25, %v2200_v48  ;;  %v3556_v13 = vadd.f32 %v1275_v61, %v3280_v30  ;;  %1891 = vrot.lane.b32.xlu0 %v1805_v53, %s3062_s12  ;;  %v2298_v32 = vsel %vm1489_vm6, %v2238_v16, %v2216_v59  ;;  %v3562_v4 = vmul.f32 0.75, %v3521_v33 }
 0x11d   : > { %4961 = vst [vmem:[#allocation10_spill] sm:$0xff] %v3553_v12  ;;  %v3564_v34 = vmul.f32 0.75, %v970_v52  ;;  %v1806_v38 = vadd.f32 %v1774_v54, %v3541_v31  ;;  %v2177_v48 = vrot.slane %v3553_v12, 1  ;;  %v3573_v53 = vmul.f32 0.75, %v3553_v12 }
 0x11e   : > { %4962 = vst [vmem:[#allocation11_spill] sm:$0xff] %v3556_v13  ;;  %4963 = vst [vmem:[#allocation12_spill] sm:$0xff] %v3562_v4  ;;  %v2457_v37 = vadd.f32 %v2425_v45, %v3530_v39  ;;  %v2193_v30 = vrot.slane %v3556_v13, 1  ;;  %v2426_v40 = vmul.f32 0.25, %v2298_v32  ;;  %v3580_v16 = vadd.f32 %v1257_v9, %v3566_v21 }
 0x11f   : > { %4964 = vst [vmem:[#allocation13_spill] sm:$0xff] %v3573_v53  ;;  %v3577_v59 = vadd.f32 %v3476_v42, %v3564_v34  ;;  %v2274_v32 = vrot.slane %v3556_v13, %v3250_v3  ;;  %v3590_v39 = vmul.f32 0.75, %v3556_v13  ;;  %v3603_v56 = vmul.f32 0.75, %v989_v41 }
 0x120   : > { %4966 = vst [vmem:[#allocation15_spill] sm:$0xff] %v3580_v16  ;;  %1893 = vrot.lane.b32.xlu1 %v1806_v38, %s3062_s12  ;;  %v2209_v54 = vsel %vm1522_vm4, %v2177_v48, %v2193_v30  ;;  %v2225_v45 = vsel %vm1522_vm4, %v2193_v30, %v2177_v48  ;;  %2523 = vrot.lane.b32.xlu0 %v2457_v37, %s3062_s12  ;;  %v1509_v38 = vrot.slane %v3580_v16, 1  ;;  %v3601_v30 = vmul.f32 0.75, %v988_v23 }
 0x121   : > { %4965 = vst [vmem:[#allocation14_spill] sm:$0xff] %v3577_v59  ;;  %4967 = vst [vmem:[#allocation16_spill] sm:$0xff] %v3590_v39  ;;  %v2443_v42 = vmul.f32 0.25, %v2209_v54  ;;  %v2458_v9 = vadd.f32 %v2426_v40, %v3562_v4  ;;  %v1493_v31 = vrot.slane %v3577_v59, 1  ;;  %v3597_v12 = vmul.f32 0.75, %v3577_v59 }
 0x122   : > { %v2316_v48 = vsel %vm1489_vm6, %v2274_v32, %v2225_v45  ;;  %v3612_v59 = vadd.f32 %v1274_v49, %v3601_v30  ;;  %v3615_v45 = vadd.f32 %v1275_v61, %v3603_v56  ;;  %v1574_v32 = vrot.slane %v3580_v16, %v3250_v3 }
 0x123   : > { %4968 = vst [vmem:[#allocation17_spill] sm:$0xff] %v3597_v12  ;;  %v2475_v13 = vadd.f32 %v2443_v42, %v3573_v53  ;;  %v1526_v37 = vsel %vm1522_vm4, %v1493_v31, %v1509_v38  ;;  %v2444_v40 = vmul.f32 0.25, %v2316_v48  ;;  %v1542_v54 = vsel %vm1522_vm4, %v1509_v38, %v1493_v31 }
 0x124   : > { %2525 = vrot.lane.b32.xlu1 %v2458_v9, %s3062_s12  ;;  %v1757_v4 = vmul.f32 0.25, %v1526_v37  ;;  %4969 = vst [vmem:[#allocation18_spill] sm:$0xff] %v3612_v59  ;;  %4970 = vst [vmem:[#allocation19_spill] sm:$0xff] %v3615_v45  ;;  %v3622_v48 = vmul.f32 0.75, %v3580_v16  ;;  %v1258_v31 = vmul.f32 0.25, %v970_v52  ;;  %v1259_v38 = vmul.f32 0.25, %v971_v17 }
 0x125   : > { %2559 = vrot.lane.b32.xlu0 %v2475_v13, %s3062_s12  ;;  %v2476_v42 = vadd.f32 %v2444_v40, %v3590_v39  ;;  %v1502_v49 = vrot.slane %v3612_v59, 1  ;;  %v1518_v37 = vrot.slane %v3615_v45, 1  ;;  %v3628_v61 = vmul.f32 0.75, %v3612_v59 }
 0x126   : > { %4971 = vst [vmem:[#allocation20_spill] sm:$0xff] %v3622_v48  ;;  %v1789_v9 = vadd.f32 %v1757_v4, %v3597_v12  ;;  %v1630_v53 = vsel %vm1489_vm6, %v1574_v32, %v1542_v54  ;;  %v3633_v13 = vadd.f32 %v1258_v31, %v3446_v10  ;;  %v3636_v40 = vadd.f32 %v1259_v38, %v3448_v11 }
 0x127   : > { %4972 = vst [vmem:[#allocation21_spill] sm:$0xff] %v3628_v61  ;;  %v1610_v52 = vrot.slane %v3615_v45, %v3250_v3  ;;  %v1535_v17 = vsel %vm1522_vm4, %v1502_v49, %v1518_v37  ;;  %v1758_v4 = vmul.f32 0.25, %v1630_v53  ;;  %v1551_v12 = vsel %vm1522_vm4, %v1518_v37, %v1502_v49  ;;  %v972_v37 = vld [vmem:[#allocation2 + $0x50] sm:$0xff] }
 0x128   : > { %4973 = vst [vmem:[#allocation22_spill] sm:$0xff] %v3633_v13  ;;  %4974 = vst [vmem:[#allocation23_spill] sm:$0xff] %v3636_v40  ;;  %2561 = vrot.lane.b32.xlu1 %v2476_v42, %s3062_s12  ;;  %v3646_v54 = vmul.f32 0.75, %v3615_v45  ;;  %v1775_v10 = vmul.f32 0.25, %v1535_v17  ;;  %v2169_v11 = vrot.slane %v3633_v13, 1  ;;  %v2185_v32 = vrot.slane %v3636_v40, 1 }
 0x129   : > { %1859 = vrot.lane.b32.xlu0 %v1789_v9, %s3062_s12  ;;  %v3652_v39 = vmul.f32 0.75, %v3633_v13  ;;  %v1790_v42 = vadd.f32 %v1758_v4, %v3622_v48  ;;  %v1648_v53 = vsel %vm1489_vm6, %v1610_v52, %v1551_v12  ;;  %v1276_v59 = vmul.f32 0.25, %v988_v23  ;;  %v973_v45 = vld [vmem:[#allocation2 + $0x58] sm:$0xff] }
 0x12a   : > { %4975 = vst [vmem:[#allocation24_spill] sm:$0xff] %v3646_v54  ;;  %v1277_v49 = vmul.f32 0.25, %v989_v41  ;;  %v1807_v16 = vadd.f32 %v1775_v10, %v3628_v61  ;;  %v2201_v9 = vsel %vm1522_vm4, %v2169_v11, %v2185_v32  ;;  %v1776_v17 = vmul.f32 0.25, %v1648_v53 }
 0x12b   : > { %4976 = vst [vmem:[#allocation25_spill] sm:$0xff] %v3652_v39  ;;  %v2217_v33 = vsel %vm1522_vm4, %v2185_v32, %v2169_v11  ;;  %v2427_v13 = vmul.f32 0.25, %v2201_v9  ;;  %v3664_v4 = vadd.f32 %v1276_v59, %v3472_v35  ;;  %v2242_v41 = vrot.slane %v3636_v40, %v3250_v3 }
 0x12c   : > { %1861 = vrot.lane.b32.xlu1 %v1790_v42, %s3062_s12  ;;  %v3667_v23 = vadd.f32 %v1277_v49, %v3474_v36  ;;  %v1808_v12 = vadd.f32 %v1776_v17, %v3646_v54  ;;  %v3674_v52 = vmul.f32 0.75, %v3636_v40  ;;  %v3676_v10 = vmul.f32 0.75, %v972_v37 }
 0x12d   : > { %4977 = vst [vmem:[#allocation26_spill] sm:$0xff] %v3664_v4  ;;  %1895 = vrot.lane.b32.xlu0 %v1807_v16, %s3062_s12  ;;  %v3678_v11 = vmul.f32 0.75, %v973_v45  ;;  %v2459_v35 = vadd.f32 %v2427_v13, %v3652_v39  ;;  %v2178_v32 = vrot.slane %v3664_v4, 1  ;;  %v3684_v42 = vmul.f32 0.75, %v3664_v4  ;;  %v990_v13 = vld [vmem:[#allocation2 + $0xe0] sm:$0xff]  ;;  %v991_v39 = vld [vmem:[#allocation2 + $0xe8] sm:$0xff] }
 0x12e   : > { %4978 = vst [vmem:[#allocation27_spill] sm:$0xff] %v3667_v23  ;;  %4979 = vst [vmem:[#allocation28_spill] sm:$0xff] %v3674_v52  ;;  %v2194_v36 = vrot.slane %v3667_v23, 1  ;;  %v2300_v16 = vsel %vm1489_vm6, %v2242_v41, %v2217_v33  ;;  %v3689_v53 = vadd.f32 %v1258_v31, %v3676_v10  ;;  %v2278_v17 = vrot.slane %v3667_v23, %v3250_v3 }
 0x12f   : > { %4980 = vst [vmem:[#allocation29_spill] sm:$0xff] %v3684_v42  ;;  %v3692_v9 = vadd.f32 %v1259_v38, %v3678_v11  ;;  %v2428_v61 = vmul.f32 0.25, %v2300_v16  ;;  %v3702_v31 = vmul.f32 0.75, %v3667_v23  ;;  %v3713_v40 = vmul.f32 0.75, %v990_v13 }
 0x130   : > { %4981 = vst [vmem:[#allocation30_spill] sm:$0xff] %v3689_v53  ;;  %1897 = vrot.lane.b32.xlu1 %v1808_v12, %s3062_s12  ;;  %v2210_v54 = vsel %vm1522_vm4, %v2178_v32, %v2194_v36  ;;  %v2226_v33 = vsel %vm1522_vm4, %v2194_v36, %v2178_v32  ;;  %v1494_v41 = vrot.slane %v3689_v53, 1  ;;  %v3708_v4 = vmul.f32 0.75, %v3689_v53 }
 0x131   : > { %4982 = vst [vmem:[#allocation31_spill] sm:$0xff] %v3692_v9  ;;  %4983 = vst [vmem:[#allocation32_spill] sm:$0xff] %v3702_v31  ;;  %2527 = vrot.lane.b32.xlu0 %v2459_v35, %s3062_s12  ;;  %v2445_v38 = vmul.f32 0.25, %v2210_v54  ;;  %v1510_v48 = vrot.slane %v3692_v9, 1  ;;  %v2460_v12 = vadd.f32 %v2428_v61, %v3674_v52  ;;  %v2318_v16 = vsel %vm1489_vm6, %v2278_v17, %v2226_v33 }
 0x132   : > { %4984 = vst [vmem:[#allocation33_spill] sm:$0xff] %v3708_v4  ;;  %v3715_v32 = vmul.f32 0.75, %v991_v39  ;;  %v2446_v35 = vmul.f32 0.25, %v2318_v16  ;;  %v3724_v61 = vadd.f32 %v1276_v59, %v3713_v40  ;;  %v1578_v33 = vrot.slane %v3692_v9, %v3250_v3 }
 0x133   : > { %v2477_v36 = vadd.f32 %v2445_v38, %v3684_v42  ;;  %v1527_v54 = vsel %vm1522_vm4, %v1494_v41, %v1510_v48  ;;  %v1543_v23 = vsel %vm1522_vm4, %v1510_v48, %v1494_v41  ;;  %v3734_v16 = vmul.f32 0.75, %v3692_v9 }
 0x134   : > { %2529 = vrot.lane.b32.xlu1 %v2460_v12, %s3062_s12  ;;  %v1759_v53 = vmul.f32 0.25, %v1527_v54  ;;  %4985 = vst [vmem:[#allocation34_spill] sm:$0xff] %v3724_v61  ;;  %v3727_v17 = vadd.f32 %v1277_v49, %v3715_v32  ;;  %v2478_v38 = vadd.f32 %v2446_v35, %v3702_v31  ;;  %v1260_v48 = vmul.f32 0.25, %v972_v37 }
 0x135   : > { %2563 = vrot.lane.b32.xlu0 %v2477_v36, %s3062_s12  ;;  %4987 = vst [vmem:[#allocation36_spill] sm:$0xff] %v3734_v16  ;;  %v1261_v41 = vmul.f32 0.25, %v973_v45  ;;  %v1503_v59 = vrot.slane %v3724_v61, 1  ;;  %v3740_v49 = vmul.f32 0.75, %v3724_v61  ;;  %v1632_v42 = vsel %vm1489_vm6, %v1578_v33, %v1543_v23 }
 0x136   : > { %4986 = vst [vmem:[#allocation35_spill] sm:$0xff] %v3727_v17  ;;  %v1791_v12 = vadd.f32 %v1759_v53, %v3708_v4  ;;  %v1519_v54 = vrot.slane %v3727_v17, 1  ;;  %v3745_v36 = vadd.f32 %v1260_v48, %v3564_v34  ;;  %v1614_v45 = vrot.slane %v3727_v17, %v3250_v3 }
 0x137   : > { %4988 = vst [vmem:[#allocation37_spill] sm:$0xff] %v3740_v49  ;;  %v3748_v35 = vadd.f32 %v1261_v41, %v3566_v21  ;;  %v1760_v53 = vmul.f32 0.25, %v1632_v42  ;;  %v3758_v23 = vmul.f32 0.75, %v3727_v17  ;;  %v1278_v52 = vmul.f32 0.25, %v990_v13  ;;  %v975_v17 = vld [vmem:[#allocation2 + $0x68] sm:$0xff] }
 0x138   : > { %4989 = vst [vmem:[#allocation38_spill] sm:$0xff] %v3745_v36  ;;  %2565 = vrot.lane.b32.xlu1 %v2478_v38, %s3062_s12  ;;  %v1536_v37 = vsel %vm1522_vm4, %v1503_v59, %v1519_v54  ;;  %v1552_v4 = vsel %vm1522_vm4, %v1519_v54, %v1503_v59  ;;  %v2170_v21 = vrot.slane %v3745_v36, 1  ;;  %v3764_v31 = vmul.f32 0.75, %v3745_v36  ;;  %v974_v54 = vld [vmem:[#allocation2 + $0x60] sm:$0xff] }
 0x139   : > { %4990 = vst [vmem:[#allocation39_spill] sm:$0xff] %v3748_v35  ;;  %4991 = vst [vmem:[#allocation40_spill] sm:$0xff] %v3758_v23  ;;  %1863 = vrot.lane.b32.xlu0 %v1791_v12, %s3062_s12  ;;  %v1777_v34 = vmul.f32 0.25, %v1536_v37  ;;  %v2186_v33 = vrot.slane %v3748_v35, 1  ;;  %v1792_v38 = vadd.f32 %v1760_v53, %v3734_v16  ;;  %v1650_v42 = vsel %vm1489_vm6, %v1614_v45, %v1552_v4 }
 0x13a   : > { %4992 = vst [vmem:[#allocation41_spill] sm:$0xff] %v3764_v31  ;;  %v1279_v59 = vmul.f32 0.25, %v991_v39  ;;  %v1778_v37 = vmul.f32 0.25, %v1650_v42  ;;  %v3776_v53 = vadd.f32 %v1278_v52, %v3601_v30  ;;  %v2246_v39 = vrot.slane %v3748_v35, %v3250_v3 }
 0x13b   : > { %v1809_v61 = vadd.f32 %v1777_v34, %v3740_v49  ;;  %v2202_v12 = vsel %vm1522_vm4, %v2170_v21, %v2186_v33  ;;  %v2218_v9 = vsel %vm1522_vm4, %v2186_v33, %v2170_v21  ;;  %v3786_v45 = vmul.f32 0.75, %v3748_v35 }
 0x13c   : > { %1865 = vrot.lane.b32.xlu1 %v1792_v38, %s3062_s12  ;;  %v2429_v36 = vmul.f32 0.25, %v2202_v12  ;;  %4993 = vst [vmem:[#allocation42_spill] sm:$0xff] %v3776_v53  ;;  %v3779_v4 = vadd.f32 %v1279_v59, %v3603_v56  ;;  %v1810_v13 = vadd.f32 %v1778_v37, %v3758_v23  ;;  %v3788_v34 = vmul.f32 0.75, %v974_v54 }
 0x13d   : > { %1899 = vrot.lane.b32.xlu0 %v1809_v61, %s3062_s12  ;;  %4995 = vst [vmem:[#allocation44_spill] sm:$0xff] %v3786_v45  ;;  %v3790_v21 = vmul.f32 0.75, %v975_v17  ;;  %v2179_v33 = vrot.slane %v3776_v53, 1  ;;  %v3796_v38 = vmul.f32 0.75, %v3776_v53  ;;  %v2302_v61 = vsel %vm1489_vm6, %v2246_v39, %v2218_v9 }
 0x13e   : > { %4994 = vst [vmem:[#allocation43_spill] sm:$0xff] %v3779_v4  ;;  %v2461_v30 = vadd.f32 %v2429_v36, %v3764_v31  ;;  %v2195_v56 = vrot.slane %v3779_v4, 1  ;;  %v3801_v42 = vadd.f32 %v1260_v48, %v3788_v34  ;;  %v2282_v37 = vrot.slane %v3779_v4, %v3250_v3  ;;  %v992_v36 = vld [vmem:[#allocation2 + $0xf0] sm:$0xff]  ;;  %v993_v31 = vld [vmem:[#allocation2 + $0xf8] sm:$0xff] }
 0x13f   : > { %4996 = vst [vmem:[#allocation45_spill] sm:$0xff] %v3796_v38  ;;  %v3804_v12 = vadd.f32 %v1261_v41, %v3790_v21  ;;  %v2430_v49 = vmul.f32 0.25, %v2302_v61  ;;  %v3814_v48 = vmul.f32 0.75, %v3779_v4  ;;  %v3825_v35 = vmul.f32 0.75, %v992_v36 }
 0x140   : > { %4997 = vst [vmem:[#allocation46_spill] sm:$0xff] %v3801_v42  ;;  %1901 = vrot.lane.b32.xlu1 %v1810_v13, %s3062_s12  ;;  %v2211_v23 = vsel %vm1522_vm4, %v2179_v33, %v2195_v56  ;;  %v2227_v9 = vsel %vm1522_vm4, %v2195_v56, %v2179_v33  ;;  %v1495_v39 = vrot.slane %v3801_v42, 1  ;;  %v3820_v53 = vmul.f32 0.75, %v3801_v42 }
 0x141   : > { %4998 = vst [vmem:[#allocation47_spill] sm:$0xff] %v3804_v12  ;;  %4999 = vst [vmem:[#allocation48_spill] sm:$0xff] %v3814_v48  ;;  %2531 = vrot.lane.b32.xlu0 %v2461_v30, %s3062_s12  ;;  %v2447_v41 = vmul.f32 0.25, %v2211_v23  ;;  %v1511_v16 = vrot.slane %v3804_v12, 1  ;;  %v2462_v13 = vadd.f32 %v2430_v49, %v3786_v45  ;;  %v2320_v61 = vsel %vm1489_vm6, %v2282_v37, %v2227_v9 }
 0x142   : > { %5000 = vst [vmem:[#allocation49_spill] sm:$0xff] %v3820_v53  ;;  %v3827_v33 = vmul.f32 0.75, %v993_v31  ;;  %v2448_v30 = vmul.f32 0.25, %v2320_v61  ;;  %v3836_v49 = vadd.f32 %v1278_v52, %v3825_v35  ;;  %v1582_v9 = vrot.slane %v3804_v12, %v3250_v3 }
 0x143   : > { %v2479_v56 = vadd.f32 %v2447_v41, %v3796_v38  ;;  %v1528_v23 = vsel %vm1522_vm4, %v1495_v39, %v1511_v16  ;;  %v1544_v4 = vsel %vm1522_vm4, %v1511_v16, %v1495_v39  ;;  %v3846_v61 = vmul.f32 0.75, %v3804_v12 }
 0x144   : > { %2533 = vrot.lane.b32.xlu1 %v2462_v13, %s3062_s12  ;;  %v1761_v42 = vmul.f32 0.25, %v1528_v23  ;;  %5001 = vst [vmem:[#allocation50_spill] sm:$0xff] %v3836_v49  ;;  %v3839_v37 = vadd.f32 %v1279_v59, %v3827_v33  ;;  %v2480_v41 = vadd.f32 %v2448_v30, %v3814_v48  ;;  %v1262_v16 = vmul.f32 0.25, %v974_v54 }
 0x145   : > { %2567 = vrot.lane.b32.xlu0 %v2479_v56, %s3062_s12  ;;  %5003 = vst [vmem:[#allocation52_spill] sm:$0xff] %v3846_v61  ;;  %v1263_v39 = vmul.f32 0.25, %v975_v17  ;;  %v1504_v52 = vrot.slane %v3836_v49, 1  ;;  %v3852_v59 = vmul.f32 0.75, %v3836_v49  ;;  %v1634_v38 = vsel %vm1489_vm6, %v1582_v9, %v1544_v4 }
 0x146   : > { %5002 = vst [vmem:[#allocation51_spill] sm:$0xff] %v3839_v37  ;;  %v1793_v13 = vadd.f32 %v1761_v42, %v3820_v53  ;;  %v1520_v23 = vrot.slane %v3839_v37, 1  ;;  %v3857_v56 = vadd.f32 %v1262_v16, %v3676_v10  ;;  %v1618_v17 = vrot.slane %v3839_v37, %v3250_v3 }
 0x147   : > { %5004 = vst [vmem:[#allocation53_spill] sm:$0xff] %v3852_v59  ;;  %v3860_v30 = vadd.f32 %v1263_v39, %v3678_v11  ;;  %v1762_v42 = vmul.f32 0.25, %v1634_v38  ;;  %v3870_v4 = vmul.f32 0.75, %v3839_v37  ;;  %v1280_v45 = vmul.f32 0.25, %v992_v36  ;;  %v977_v37 = vld [vmem:[#allocation2 + $0x78] sm:$0xff] }
 0x148   : > { %5005 = vst [vmem:[#allocation54_spill] sm:$0xff] %v3857_v56  ;;  %2569 = vrot.lane.b32.xlu1 %v2480_v41, %s3062_s12  ;;  %v1537_v54 = vsel %vm1522_vm4, %v1504_v52, %v1520_v23  ;;  %v1553_v53 = vsel %vm1522_vm4, %v1520_v23, %v1504_v52  ;;  %v2171_v11 = vrot.slane %v3857_v56, 1  ;;  %v3876_v48 = vmul.f32 0.75, %v3857_v56  ;;  %v976_v23 = vld [vmem:[#allocation2 + $0x70] sm:$0xff] }
 0x149   : > { %5006 = vst [vmem:[#allocation55_spill] sm:$0xff] %v3860_v30  ;;  %5007 = vst [vmem:[#allocation56_spill] sm:$0xff] %v3870_v4  ;;  %1867 = vrot.lane.b32.xlu0 %v1793_v13, %s3062_s12  ;;  %v1779_v10 = vmul.f32 0.25, %v1537_v54  ;;  %v2187_v9 = vrot.slane %v3860_v30, 1  ;;  %v1794_v41 = vadd.f32 %v1762_v42, %v3846_v61  ;;  %v1652_v38 = vsel %vm1489_vm6, %v1618_v17, %v1553_v53 }
 0x14a   : > { %5008 = vst [vmem:[#allocation57_spill] sm:$0xff] %v3876_v48  ;;  %v1281_v52 = vmul.f32 0.25, %v993_v31  ;;  %v1780_v54 = vmul.f32 0.25, %v1652_v38  ;;  %v3888_v42 = vadd.f32 %v1280_v45, %v3713_v40  ;;  %v2250_v31 = vrot.slane %v3860_v30, %v3250_v3 }
 0x14b   : > { %v1811_v49 = vadd.f32 %v1779_v10, %v3852_v59  ;;  %v2203_v13 = vsel %vm1522_vm4, %v2171_v11, %v2187_v9  ;;  %v2219_v12 = vsel %vm1522_vm4, %v2187_v9, %v2171_v11  ;;  %v3898_v17 = vmul.f32 0.75, %v3860_v30 }
 0x14c   : > { %1869 = vrot.lane.b32.xlu1 %v1794_v41, %s3062_s12  ;;  %v2431_v56 = vmul.f32 0.25, %v2203_v13  ;;  %5009 = vst [vmem:[#allocation58_spill] sm:$0xff] %v3888_v42  ;;  %v3891_v53 = vadd.f32 %v1281_v52, %v3715_v32  ;;  %v1812_v36 = vadd.f32 %v1780_v54, %v3870_v4  ;;  %v3900_v10 = vmul.f32 0.75, %v976_v23 }
 0x14d   : > { %1903 = vrot.lane.b32.xlu0 %v1811_v49, %s3062_s12  ;;  %5011 = vst [vmem:[#allocation60_spill] sm:$0xff] %v3898_v17  ;;  %v3902_v11 = vmul.f32 0.75, %v977_v37  ;;  %v2180_v9 = vrot.slane %v3888_v42, 1  ;;  %v3908_v41 = vmul.f32 0.75, %v3888_v42  ;;  %v2304_v49 = vsel %vm1489_vm6, %v2250_v31, %v2219_v12 }
 0x14e   : > { %5010 = vst [vmem:[#allocation59_spill] sm:$0xff] %v3891_v53  ;;  %v2463_v40 = vadd.f32 %v2431_v56, %v3876_v48  ;;  %v2196_v32 = vrot.slane %v3891_v53, 1  ;;  %v3913_v38 = vadd.f32 %v1262_v16, %v3900_v10  ;;  %v2286_v54 = vrot.slane %v3891_v53, %v3250_v3  ;;  %v994_v56 = vld [vmem:[#allocation2 + $0x100] sm:$0xff]  ;;  %v995_v48 = vld [vmem:[#allocation2 + $0x108] sm:$0xff] }
 0x14f   : > { %5012 = vst [vmem:[#allocation61_spill] sm:$0xff] %v3908_v41  ;;  %v3916_v13 = vadd.f32 %v1263_v39, %v3902_v11  ;;  %v2432_v59 = vmul.f32 0.25, %v2304_v49  ;;  %v3926_v16 = vmul.f32 0.75, %v3891_v53  ;;  %v1220_v30 = vmul.f32 0.75, %v994_v56 }
 0x150   : > { %5013 = vst [vmem:[#allocation62_spill] sm:$0xff] %v3913_v38  ;;  %1905 = vrot.lane.b32.xlu1 %v1812_v36, %s3062_s12  ;;  %v2212_v4 = vsel %vm1522_vm4, %v2180_v9, %v2196_v32  ;;  %v2228_v12 = vsel %vm1522_vm4, %v2196_v32, %v2180_v9  ;;  %v1496_v31 = vrot.slane %v3913_v38, 1  ;;  %v3932_v42 = vmul.f32 0.75, %v3913_v38 }
 0x151   : > { %5014 = vst [vmem:[#allocation63_spill] sm:$0xff] %v3926_v16  ;;  %2535 = vrot.lane.b32.xlu0 %v2463_v40, %s3062_s12  ;;  %v2449_v39 = vmul.f32 0.25, %v2212_v4  ;;  %v1512_v61 = vrot.slane %v3916_v13, 1  ;;  %v2464_v36 = vadd.f32 %v2432_v59, %v3898_v17  ;;  %v2322_v49 = vsel %vm1489_vm6, %v2286_v54, %v2228_v12  ;;  %v997_v17 = vld [vmem:[#allocation2 + $0x8] sm:$0xff] }
 0x152   : > { %5015 = vst [vmem:[#allocation64_spill] sm:$0xff] %v3932_v42  ;;  %v3937_v9 = vmul.f32 0.75, %v995_v48  ;;  %v2450_v40 = vmul.f32 0.25, %v2322_v49  ;;  %v1284_v53 = vmul.f32 0.25, %v994_v56  ;;  %v3943_v38 = vadd.f32 %v1280_v45, %v1220_v30 }
 0x153   : > { %v2481_v32 = vadd.f32 %v2449_v39, %v3908_v41  ;;  %v1529_v4 = vsel %vm1522_vm4, %v1496_v31, %v1512_v61  ;;  %v1545_v54 = vsel %vm1522_vm4, %v1512_v61, %v1496_v31  ;;  %v1586_v56 = vrot.slane %v3916_v13, %v3250_v3 }
 0x154   : > { %2537 = vrot.lane.b32.xlu1 %v2464_v36, %s3062_s12  ;;  %v1763_v6 = vmul.f32 0.25, %v1529_v4  ;;  %v3946_v59 = vadd.f32 %v1281_v52, %v3937_v9  ;;  %v2482_v12 = vadd.f32 %v2450_v40, %v3926_v16  ;;  %v3952_v39 = vadd.f32 %v1284_v53, %v1220_v30 }
 0x155   : > { %2571 = vrot.lane.b32.xlu0 %v2481_v32, %s3062_s12  ;;  %v3957_v36 = vmul.f32 0.75, %v3916_v13  ;;  %v1505_v52 = vrot.slane %v3943_v38, 1  ;;  %v3963_v61 = vmul.f32 0.75, %v3943_v38  ;;  %v1636_v31 = vsel %vm1489_vm6, %v1586_v56, %v1545_v54 }
 0x156   : > { %v1795_v45 = vadd.f32 %v1763_v6, %v3932_v42  ;;  %v1521_v49 = vrot.slane %v3946_v59, 1  ;;  %v1264_v30 = vmul.f32 0.25, %v976_v23  ;;  %v1265_v32 = vmul.f32 0.25, %v977_v37 }
 0x157   : > { %5016 = vst [vmem:[#allocation65_spill] sm:$0xff] %v3957_v36  ;;  %5017 = vst [vmem:[#allocation66_spill] sm:$0xff] %v3963_v61  ;;  %v1622_v4 = vrot.slane %v3946_v59, %v3250_v3  ;;  %v1764_v40 = vmul.f32 0.25, %v1636_v31  ;;  %v3975_v16 = vmul.f32 0.75, %v3946_v59  ;;  %v3987_v41 = vmul.f32 0.25, %v995_v48 }
 0x158   : > { %2573 = vrot.lane.b32.xlu1 %v2482_v12, %s3062_s12  ;;  %v1538_v6 = vsel %vm1522_vm4, %v1505_v52, %v1521_v49  ;;  %v1554_v42 = vsel %vm1522_vm4, %v1521_v49, %v1505_v52  ;;  %v3979_v37 = vadd.f32 %v1264_v30, %v3788_v34  ;;  %v3982_v23 = vadd.f32 %v1265_v32, %v3790_v21 }
 0x159   : > { %5018 = vst [vmem:[#allocation67_spill] sm:$0xff] %v3975_v16  ;;  %1871 = vrot.lane.b32.xlu0 %v1795_v45, %s3062_s12  ;;  %v1781_v54 = vmul.f32 0.25, %v1538_v6  ;;  %v1654_v12 = vsel %vm1489_vm6, %v1622_v4, %v1554_v42  ;;  %v1796_v56 = vadd.f32 %v1764_v40, %v3957_v36  ;;  %v3990_v52 = vadd.f32 %v1284_v53, %v3825_v35  ;;  %v996_v6 = vld [vmem:[#allocation2] sm:$0xff]  ;;  %v979_v36 = vld [vmem:[#allocation2 + $0x88] sm:$0xff] }
 0x15a   : > { %5019 = vst [vmem:[#allocation68_spill] sm:$0xff] %v3979_v37  ;;  %5020 = vst [vmem:[#allocation69_spill] sm:$0xff] %v3982_v23  ;;  %v1782_v31 = vmul.f32 0.25, %v1654_v12  ;;  %v2172_v49 = vrot.slane %v3979_v37, 1  ;;  %v2188_v34 = vrot.slane %v3982_v23, 1  ;;  %v3996_v21 = vmul.f32 0.75, %v3979_v37 }
 0x15b   : > { %5021 = vst [vmem:[#allocation70_spill] sm:$0xff] %v3990_v52  ;;  %v1813_v45 = vadd.f32 %v1781_v54, %v3963_v61  ;;  %v4002_v48 = vadd.f32 %v3987_v41, %v3827_v33  ;;  %v2181_v35 = vrot.slane %v3990_v52, 1  ;;  %v4006_v53 = vmul.f32 0.75, %v3990_v52  ;;  %v978_v4 = vld [vmem:[#allocation2 + $0x80] sm:$0xff] }
 0x15c   : > { %5022 = vst [vmem:[#allocation71_spill] sm:$0xff] %v3996_v21  ;;  %1873 = vrot.lane.b32.xlu1 %v1796_v56, %s3062_s12  ;;  %v1814_v42 = vadd.f32 %v1782_v31, %v3975_v16  ;;  %v2204_v40 = vsel %vm1522_vm4, %v2172_v49, %v2188_v34  ;;  %v2220_v54 = vsel %vm1522_vm4, %v2188_v34, %v2172_v49  ;;  %v4016_v33 = vmul.f32 0.75, %v3982_v23 }
 0x15d   : > { %5023 = vst [vmem:[#allocation72_spill] sm:$0xff] %v4002_v48  ;;  %5024 = vst [vmem:[#allocation73_spill] sm:$0xff] %v4006_v53  ;;  %1907 = vrot.lane.b32.xlu0 %v1813_v45, %s3062_s12  ;;  %v2254_v12 = vrot.slane %v3982_v23, %v3250_v3  ;;  %v2433_v56 = vmul.f32 0.25, %v2204_v40  ;;  %v2197_v31 = vrot.slane %v4002_v48, 1  ;;  %v1158_v16 = vmul.f32 0.25, %v996_v6 }
 0x15e   : > { %5025 = vst [vmem:[#allocation74_spill] sm:$0xff] %v4016_v33  ;;  %v1159_v61 = vmul.f32 0.25, %v997_v17  ;;  %v2290_v52 = vrot.slane %v4002_v48, %v3250_v3  ;;  %v4024_v49 = vmul.f32 0.75, %v4002_v48  ;;  %v1204_v34 = vmul.f32 0.75, %v978_v4 }
 0x15f   : > { %v2306_v45 = vsel %vm1489_vm6, %v2254_v12, %v2220_v54  ;;  %v2465_v37 = vadd.f32 %v2433_v56, %v3996_v21  ;;  %v2213_v40 = vsel %vm1522_vm4, %v2181_v35, %v2197_v31  ;;  %v4031_v17 = vadd.f32 %v3268_v20, %v1158_v16 }
 0x160   : > { %5026 = vst [vmem:[#allocation75_spill] sm:$0xff] %v4024_v49  ;;  %1909 = vrot.lane.b32.xlu1 %v1814_v42, %s3062_s12  ;;  %v2434_v6 = vmul.f32 0.25, %v2306_v45  ;;  %v2451_v23 = vmul.f32 0.25, %v2213_v40  ;;  %v4034_v54 = vadd.f32 %v3262_v14, %v1159_v61  ;;  %v2229_v12 = vsel %vm1522_vm4, %v2197_v31, %v2181_v35 }
 0x161   : > { %v4038_v48 = vmul.f32 0.75, %v979_v36  ;;  %2539 = vrot.lane.b32.xlu0 %v2465_v37, %s3062_s12  ;;  %v1490_v56 = vrot.slane %v4031_v17, 1  ;;  %v4044_v45 = vmul.f32 0.75, %v4031_v17  ;;  %v2324_v20 = vsel %vm1489_vm6, %v2290_v52, %v2229_v12 }
 0x162   : > { %v2466_v42 = vadd.f32 %v2434_v6, %v4016_v33  ;;  %v2483_v14 = vadd.f32 %v2451_v23, %v4006_v53  ;;  %v1506_v16 = vrot.slane %v4034_v54, 1  ;;  %v2452_v61 = vmul.f32 0.25, %v2324_v20 }
 0x163   : > { %5027 = vst [vmem:[#allocation76_spill] sm:$0xff] %v4044_v45  ;;  %v4050_v35 = vadd.f32 %v1264_v30, %v1204_v34  ;;  %v4054_v37 = vadd.f32 %v1265_v32, %v4038_v48  ;;  %v4057_v31 = vadd.f32 %v1204_v34, %v3506_v19  ;;  %v1266_v40 = vmul.f32 0.25, %v978_v4 }
 0x164   : > { %2541 = vrot.lane.b32.xlu1 %v2466_v42, %s3062_s12  ;;  %v1267_v6 = vmul.f32 0.25, %v979_v36  ;;  %v1523_v52 = vsel %vm1522_vm4, %v1490_v56, %v1506_v16  ;;  %v2484_v23 = vadd.f32 %v2452_v61, %v4024_v49  ;;  %v1539_v20 = vsel %vm1522_vm4, %v1506_v16, %v1490_v56 }
 0x165   : > { %5028 = vst [vmem:[#allocation77_spill] sm:$0xff] %v4050_v35  ;;  %5029 = vst [vmem:[#allocation78_spill] sm:$0xff] %v4054_v37  ;;  %v1497_v12 = vrot.slane %v4050_v35, 1  ;;  %v4064_v30 = vmul.f32 0.75, %v4050_v35  ;;  %2575 = vrot.lane.b32.xlu0 %v2483_v14, %s3062_s12  ;;  %v1751_v42 = vmul.f32 0.25, %v1523_v52  ;;  %v1513_v32 = vrot.slane %v4054_v37, 1 }
 0x166   : > { %5030 = vst [vmem:[#allocation79_spill] sm:$0xff] %v4057_v31  ;;  %v1590_v19 = vrot.slane %v4054_v37, %v3250_v3  ;;  %v4071_v36 = vmul.f32 0.75, %v4054_v37  ;;  %v4074_v4 = vadd.f32 %v1266_v40, %v3900_v10  ;;  %v4077_v34 = vadd.f32 %v1267_v6, %v3902_v11 }
 0x167   : > { %5031 = vst [vmem:[#allocation80_spill] sm:$0xff] %v4064_v30  ;;  %v1562_v14 = vrot.slane %v4034_v54, %v3250_v3  ;;  %v1783_v61 = vadd.f32 %v1751_v42, %v4044_v45  ;;  %v1530_v52 = vsel %vm1522_vm4, %v1497_v12, %v1513_v32  ;;  %v1546_v10 = vsel %vm1522_vm4, %v1513_v32, %v1497_v12  ;;  %v981_v45 = vld [vmem:[#allocation2 + $0x98] sm:$0xff] }
 0x168   : > { %5032 = vst [vmem:[#allocation81_spill] sm:$0xff] %v4074_v4  ;;  %5033 = vst [vmem:[#allocation82_spill] sm:$0xff] %v4077_v34  ;;  %2577 = vrot.lane.b32.xlu1 %v2484_v23, %s3062_s12  ;;  %v4090_v49 = vmul.f32 0.75, %v4034_v54  ;;  %v1765_v11 = vmul.f32 0.25, %v1530_v52  ;;  %v1638_v56 = vsel %vm1489_vm6, %v1590_v19, %v1546_v10  ;;  %v2173_v16 = vrot.slane %v4074_v4, 1  ;;  %v980_v52 = vld [vmem:[#allocation2 + $0x90] sm:$0xff] }
 0x169   : > { %v2189_v53 = vrot.slane %v4077_v34, 1  ;;  %1847 = vrot.lane.b32.xlu0 %v1783_v61, %s3062_s12  ;;  %v1766_v23 = vmul.f32 0.25, %v1638_v56  ;;  %v4098_v42 = vmul.f32 0.75, %v4074_v4  ;;  %v2258_v12 = vrot.slane %v4077_v34, %v3250_v3 }
 0x16a   : > { %5034 = vst [vmem:[#allocation83_spill] sm:$0xff] %v4090_v49  ;;  %v4103_v32 = vmul.f32 0.75, %v4077_v34  ;;  %v1797_v19 = vadd.f32 %v1765_v11, %v4064_v30  ;;  %v1624_v56 = vsel %vm1489_vm6, %v1562_v14, %v1539_v20  ;;  %v4115_v35 = vmul.f32 0.75, %v980_v52 }
 0x16b   : > { %5035 = vst [vmem:[#allocation84_spill] sm:$0xff] %v4098_v42  ;;  %v2205_v10 = vsel %vm1522_vm4, %v2173_v16, %v2189_v53  ;;  %v2221_v61 = vsel %vm1522_vm4, %v2189_v53, %v2173_v16  ;;  %v1798_v4 = vadd.f32 %v1766_v23, %v4071_v36  ;;  %v1752_v21 = vmul.f32 0.25, %v1624_v56 }
 0x16c   : > { %5036 = vst [vmem:[#allocation85_spill] sm:$0xff] %v4103_v32  ;;  %v2435_v33 = vmul.f32 0.25, %v2205_v10  ;;  %v2308_v34 = vsel %vm1489_vm6, %v2258_v12, %v2221_v61  ;;  %v4117_v11 = vmul.f32 0.75, %v981_v45  ;;  %v1177_v30 = vmul.f32 0.25, %v981_v45 }
 0x16d   : > { %v2436_v37 = vmul.f32 0.25, %v2308_v34  ;;  %1875 = vrot.lane.b32.xlu0 %v1797_v19, %s3062_s12  ;;  %1877 = vrot.lane.b32.xlu1 %v1798_v4, %s3062_s12  ;;  %v1784_v20 = vadd.f32 %v1752_v21, %v4090_v49  ;;  %v1499_v14 = vrot.slane %v3525_v62, 1  ;;  %v4125_v16 = vmul.f32 0.75, %v3525_v62 }
 0x16e   : > { %v2467_v53 = vadd.f32 %v2435_v33, %v4098_v42  ;;  %v4129_v23 = vadd.f32 %v1266_v40, %v4115_v35  ;;  %v4132_v45 = vadd.f32 %v1267_v6, %v4117_v11  ;;  %v4135_v4 = vadd.f32 %v3264_v15, %v1177_v30 }
 0x16f   : > { %v2468_v34 = vadd.f32 %v2436_v37, %v4103_v32  ;;  %v4138_v33 = vadd.f32 %v4038_v48, %v1177_v30  ;;  %v2174_v21 = vrot.slane %v4057_v31, 1  ;;  %v4142_v12 = vmul.f32 0.75, %v4057_v31 }
 0x170   : > { %v5037_v37 = vrot.slane %v3304_v47, 7  ;;  %v5038_v40 = vrot.slane %v3312_v51, 7  ;;  %v1498_v52 = vrot.slane %v4129_v23, 1  ;;  %v1514_v15 = vrot.slane %v4132_v45, 1 }
 0x171   : > { %v1594_v48 = vrot.slane %v4132_v45, %v3250_v3  ;;  %v4155_v30 = vmul.f32 0.75, %v4132_v45  ;;  %2543 = vrot.lane.b32.xlu0 %v2467_v53, %s3062_s12  ;;  %2545 = vrot.lane.b32.xlu1 %v2468_v34, %s3062_s12  ;;  %v4160_v47 = vmul.f32 0.75, %v4129_v23  ;;  %v1515_v51 = vrot.slane %v4135_v4, 1 }
 0x172   : > { %v1357_v6 = vsel %vm1355_vm3, %v5038_v40, %v5037_v37  ;;  %v1598_v19 = vrot.slane %v4135_v4, %v3250_v3  ;;  %v4166_v10 = vmul.f32 0.75, %v4135_v4  ;;  %v1547_v61 = vsel %vm1522_vm4, %v1514_v15, %v1498_v52 }
 0x173   : > { %v1531_v56 = vsel %vm1522_vm4, %v1498_v52, %v1514_v15  ;;  %v2190_v53 = vrot.slane %v4138_v33, 1  ;;  %v2262_v34 = vrot.slane %v4138_v33, %v3250_v3  ;;  %v1640_v37 = vsel %vm1489_vm6, %v1594_v48, %v1547_v61 }
 0x174   : > { %v1767_v40 = vmul.f32 0.25, %v1531_v56  ;;  %v1548_v49 = vsel %vm1522_vm4, %v1515_v51, %v1499_v14  ;;  %v1532_v31 = vsel %vm1522_vm4, %v1499_v14, %v1515_v51  ;;  %v1768_v32 = vmul.f32 0.25, %v1640_v37 }
 0x175   : > { %v1642_v42 = vsel %vm1489_vm6, %v1598_v19, %v1548_v49  ;;  %v1769_v52 = vmul.f32 0.25, %v1532_v31  ;;  %v2222_v15 = vsel %vm1522_vm4, %v2190_v53, %v2174_v21  ;;  %1849 = vrot.lane.b32.xlu0 %v1784_v20, %s3062_s12  ;;  %v4196_v49 = vmul.f32 0.75, %v4138_v33 }
 0x176   : > { %v1799_v48 = vadd.f32 %v1767_v40, %v4160_v47  ;;  %v1770_v61 = vmul.f32 0.25, %v1642_v42  ;;  %v2310_v14 = vsel %vm1489_vm6, %v2262_v34, %v2222_v15  ;;  %v1800_v31 = vadd.f32 %v1768_v32, %v4155_v30  ;;  %v1888_v19 = vpop.permute.xlu0 %1887 }
 0x177   : > { %v1801_v51 = vadd.f32 %v1769_v52, %v4125_v16  ;;  %v2438_v56 = vmul.f32 0.25, %v2310_v14  ;;  %v2206_v20 = vsel %vm1522_vm4, %v2174_v21, %v2190_v53  ;;  %v1963_v42 = vsel %vm760_vm2, %v3364_v44, %v1888_v19  ;;  %v1852_v40 = vpop.permute.xlu1 %1851 }
 0x178   : > { %v1802_v37 = vadd.f32 %v1770_v61, %v4166_v10  ;;  %v2437_v34 = vmul.f32 0.25, %v2206_v20  ;;  %v1658_v15 = vmul.f32 0.25, %v1357_v6  ;;  %1881 = vrot.lane.b32.xlu1 %v1800_v31, %s3062_s12  ;;  %1995 = vst.msk [vmem:[%s4189_s16 + $0x140] sm:$0xff] %vm433_vm1, %v1963_v42  ;;  %v1945_v32 = vsel %vm760_vm2, %v3391_v5, %v1852_v40  ;;  %v3009_v61 = vpop.f32.mrb[16].mxu1 }
 0x179   : > { %v2470_v52 = vadd.f32 %v2438_v56, %v4196_v49  ;;  %v2023_v14 = vrot.slane %v3385_v0, 7  ;;  %v2007_v21 = vrot.slane %v3381_v63, 7  ;;  %1879 = vrot.lane.b32.xlu0 %v1799_v48, %s3062_s12  ;;  %1977 = vst.msk [vmem:[%s4189_s16 + $0x20] sm:$0xff] %vm433_vm1, %v1945_v32  ;;  %v2074_v53 = vrot.slane %v3381_v63, %v3247_v1  ;;  %v952_v56 = vpop.f32.mrb[17].mxu1 }
 0x17a   : > { %v2469_v44 = vadd.f32 %v2437_v34, %v4142_v12  ;;  %v1722_v6 = vadd.f32 %v3375_v58, %v1658_v15  ;;  %v4222_v5 = vadd.f32 %v3274_v27, %v4115_v35  ;;  %v4228_v48 = vadd.f32 %v3276_v28, %v4117_v11 }
 0x17b   : > { %v2055_v0 = vsel %vm1355_vm3, %v2023_v14, %v2007_v21  ;;  %v5039_v31 = vrot.slane %v3301_v46, 7  ;;  %v5040_v19 = vrot.slane %v3309_v50, 7  ;;  %v2016_v63 = vrot.slane %v3417_v26, 7 }
 0x17c   : > { %v2135_v27 = vsel %vm1321_vm5, %v2074_v53, %v2055_v0  ;;  %v2175_v35 = vrot.slane %v4222_v5, 1  ;;  %v4241_v20 = vmul.f32 0.75, %v4222_v5  ;;  %1885 = vrot.lane.b32.xlu1 %v1802_v37, %s3062_s12  ;;  %v2191_v50 = vrot.slane %v4228_v48, 1 }
 0x17d   : > { %v1366_v58 = vsel %vm1355_vm3, %v5040_v19, %v5039_v31  ;;  %v2327_v46 = vmul.f32 0.25, %v2135_v27  ;;  %v2266_v11 = vrot.slane %v4228_v48, %v3250_v3  ;;  %v4248_v42 = vmul.f32 0.75, %v4228_v48  ;;  %1883 = vrot.lane.b32.xlu0 %v1801_v51, %s3062_s12 }
 0x17e   : > { %v1676_v28 = vmul.f32 0.25, %v1366_v58  ;;  %v1854_v40 = vpop.permute.xlu1 %1853  ;;  %v2032_v15 = vrot.slane %v3421_v29, 7  ;;  %v2110_v32 = vrot.slane %v3417_v26, %v3247_v1  ;;  %v4257_v37 = vadd.f32 %v3987_v41, %v3937_v9 }
 0x17f   : > { %v1946_v53 = vsel %vm760_vm2, %v1722_v6, %v1854_v40  ;;  %v2391_v61 = vadd.f32 %v3405_v18, %v2327_v46  ;;  %v2223_v0 = vsel %vm1522_vm4, %v2191_v50, %v2175_v35  ;;  %v2207_v51 = vsel %vm1522_vm4, %v2175_v35, %v2191_v50 }
 0x180   : > { %v1740_v34 = vadd.f32 %v3410_v22, %v1676_v28  ;;  %1978 = vst.msk [vmem:[%s4189_s16 + $0x28] sm:$0xff] %vm433_vm1, %v1946_v53  ;;  %v2312_v22 = vsel %vm1489_vm6, %v2266_v11, %v2223_v0  ;;  %v2439_v26 = vmul.f32 0.25, %v2207_v51  ;;  %v2064_v29 = vsel %vm1355_vm3, %v2032_v15, %v2016_v63  ;;  %2549 = vrot.lane.b32.xlu1 %v2470_v52, %s3062_s12 }
 0x181   : > { %v2182_v41 = vrot.slane %v3952_v39, 1  ;;  %v2440_v18 = vmul.f32 0.25, %v2312_v22  ;;  %v2153_v9 = vsel %vm1321_vm5, %v2110_v32, %v2064_v29  ;;  %v2198_v6 = vrot.slane %v4257_v37, 1  ;;  %2547 = vrot.lane.b32.xlu0 %v2469_v44, %s3062_s12  ;;  %v2520_v19 = vpop.permute.xlu0 %2519 }
 0x182   : > { %v2294_v31 = vrot.slane %v4257_v37, %v3250_v3  ;;  %v2471_v58 = vadd.f32 %v2439_v26, %v4241_v20  ;;  %v1890_v56 = vpop.permute.xlu1 %1889  ;;  %v2345_v27 = vmul.f32 0.25, %v2153_v9  ;;  %v4281_v52 = vmul.f32 0.75, %v4257_v37 }
 0x183   : > { %v4284_v35 = vmul.f32 0.75, %v3952_v39  ;;  %v2615_v28 = vsel %vm760_vm2, %v2391_v61, %v2520_v19  ;;  %v2472_v46 = vadd.f32 %v2440_v18, %v4248_v42  ;;  %v1964_v50 = vsel %vm760_vm2, %v1740_v34, %v1890_v56  ;;  %v5041_v19 = vld [vmem:[#allocation3_spill] sm:$0xff] }
 0x184   : > { %v2230_v3 = vsel %vm1522_vm4, %v2198_v6, %v2182_v41  ;;  %2871 = vst.msk [vmem:[%s4189_s16 + $0x10] sm:$0xff] %vm433_vm1, %v2615_v28  ;;  %1996 = vst.msk [vmem:[%s4189_s16 + $0x148] sm:$0xff] %vm433_vm1, %v1964_v50  ;;  %v2409_v44 = vadd.f32 %v3437_v2, %v2345_v27  ;;  %v2214_v40 = vsel %vm1522_vm4, %v2182_v41, %v2198_v6  ;;  %v1325_v0 = vrot.slane %v3464_v24, 7  ;;  %v5042_v50 = vld [vmem:[#allocation7_spill] sm:$0xff] }
 0x185   : > { %v2326_v11 = vsel %vm1489_vm6, %v2294_v31, %v2230_v3  ;;  %v2039_v32 = vsel %vm1355_vm3, %v2007_v21, %v2023_v14  ;;  %2553 = vrot.lane.b32.xlu1 %v2472_v46, %s3062_s12  ;;  %v2453_v53 = vmul.f32 0.25, %v2214_v40  ;;  %2551 = vrot.lane.b32.xlu0 %v2471_v58, %s3062_s12  ;;  %v2556_v2 = vpop.permute.xlu0 %2555  ;;  %v1341_v8 = vrot.slane %v3468_v25, 7  ;;  %v5043_v40 = vld [vmem:[#allocation4_spill] sm:$0xff] }
 0x186   : > { %v2454_v34 = vmul.f32 0.25, %v2326_v11  ;;  %v2328_v61 = vmul.f32 0.25, %v2039_v32  ;;  %v2522_v51 = vpop.permute.xlu1 %2521  ;;  %v1403_v22 = vrot.slane %v3464_v24, %v3247_v1  ;;  %v2048_v14 = vsel %vm1355_vm3, %v2016_v63, %v2032_v15 }
 0x187   : > { %v1334_v21 = vrot.slane %v3486_v57, 7  ;;  %v2633_v26 = vsel %vm760_vm2, %v2409_v44, %v2556_v2  ;;  %v2485_v41 = vadd.f32 %v2453_v53, %v4284_v35  ;;  %v1374_v25 = vsel %vm1355_vm3, %v1341_v8, %v1325_v0 }
 0x188   : > { %v2486_v29 = vadd.f32 %v2454_v34, %v4281_v52  ;;  %v2392_v18 = vadd.f32 %v3442_v7, %v2328_v61  ;;  %2889 = vst.msk [vmem:[%s4189_s16 + $0x130] sm:$0xff] %vm433_vm1, %v2633_v26  ;;  %v2346_v24 = vmul.f32 0.25, %v2048_v14  ;;  %v1350_v9 = vrot.slane %v3490_v60, 7  ;;  %v5044_v61 = vld [vmem:[#allocation5_spill] sm:$0xff]  ;;  %v5047_v26 = vld [vmem:[#allocation6_spill] sm:$0xff] }
 0x189   : > { %v1439_v63 = vrot.slane %v3486_v57, %v3247_v1  ;;  %v1460_v6 = vsel %vm1321_vm5, %v1403_v22, %v1374_v25  ;;  %v1358_v7 = vsel %vm1355_vm3, %v1325_v0, %v1341_v8  ;;  %v2008_v31 = vrot.slane %v3515_v43, 7  ;;  %2579 = vrot.lane.b32.xlu0 %v2485_v41, %s3062_s12  ;;  %v5045_v8 = vld [vmem:[#allocation10_spill] sm:$0xff]  ;;  %v5046_v22 = vld [vmem:[#allocation11_spill] sm:$0xff] }
 0x18a   : > { %2581 = vrot.lane.b32.xlu1 %v2486_v29, %s3062_s12  ;;  %v2616_v15 = vsel %vm760_vm2, %v2392_v18, %v2522_v51  ;;  %v1659_v60 = vmul.f32 0.25, %v1460_v6  ;;  %v2410_v57 = vadd.f32 %v5041_v19, %v2346_v24  ;;  %v2558_v58 = vpop.permute.xlu1 %2557  ;;  %v1383_v56 = vsel %vm1355_vm3, %v1350_v9, %v1334_v21  ;;  %v1856_v28 = vpop.permute.xlu0 %1855 }
 0x18b   : > { %2872 = vst.msk [vmem:[%s4189_s16 + $0x18] sm:$0xff] %vm433_vm1, %v2616_v15  ;;  %v1660_v27 = vmul.f32 0.25, %v1358_v7  ;;  %v1478_v46 = vsel %vm1321_vm5, %v1439_v63, %v1383_v56  ;;  %v2024_v3 = vrot.slane %v5042_v50, 7  ;;  %v2078_v44 = vrot.slane %v3515_v43, %v3247_v1  ;;  %v5048_v15 = vld [vmem:[#allocation9_spill] sm:$0xff] }
 0x18c   : > { %v1367_v11 = vsel %vm1355_vm3, %v1334_v21, %v1350_v9  ;;  %v1723_v32 = vadd.f32 %v5043_v40, %v1659_v60  ;;  %v2634_v34 = vsel %vm760_vm2, %v2410_v57, %v2558_v58  ;;  %v1677_v53 = vmul.f32 0.25, %v1478_v46  ;;  %v5049_v58 = vld [vmem:[#allocation14_spill] sm:$0xff] }
 0x18d   : > { %v1724_v0 = vadd.f32 %v5044_v61, %v1660_v27  ;;  %2890 = vst.msk [vmem:[%s4189_s16 + $0x138] sm:$0xff] %vm433_vm1, %v2634_v34  ;;  %v2056_v2 = vsel %vm1355_vm3, %v2024_v3, %v2008_v31  ;;  %v1678_v51 = vmul.f32 0.25, %v1367_v11  ;;  %v2017_v43 = vrot.slane %v5045_v8, 7  ;;  %v5050_v27 = vld [vmem:[#allocation8_spill] sm:$0xff] }
 0x18e   : > { %v2033_v14 = vrot.slane %v5046_v22, 7  ;;  %v1947_v21 = vsel %vm760_vm2, %v1723_v32, %v1856_v28  ;;  %v1741_v29 = vadd.f32 %v5047_v26, %v1677_v53  ;;  %v1858_v41 = vpop.permute.xlu1 %1857  ;;  %v2137_v18 = vsel %vm1321_vm5, %v2078_v44, %v2056_v2  ;;  %v1892_v24 = vpop.permute.xlu0 %1891  ;;  %v5051_v44 = vld [vmem:[#allocation15_spill] sm:$0xff] }
 0x18f   : > { %v2114_v25 = vrot.slane %v5045_v8, %v3247_v1  ;;  %1979 = vst.msk [vmem:[%s4189_s16 + $0x40] sm:$0xff] %vm433_vm1, %v1947_v21  ;;  %v1948_v9 = vsel %vm760_vm2, %v1724_v0, %v1858_v41  ;;  %v2329_v63 = vmul.f32 0.25, %v2137_v18  ;;  %v1742_v6 = vadd.f32 %v5048_v15, %v1678_v51  ;;  %v5053_v53 = vld [vmem:[#allocation19_spill] sm:$0xff]  ;;  %v5055_v41 = vld [vmem:[#allocation22_spill] sm:$0xff] }
 0x190   : > { %v2065_v7 = vsel %vm1355_vm3, %v2033_v14, %v2017_v43  ;;  %v1965_v60 = vsel %vm760_vm2, %v1741_v29, %v1892_v24  ;;  %1980 = vst.msk [vmem:[%s4189_s16 + $0x48] sm:$0xff] %vm433_vm1, %v1948_v9  ;;  %v2040_v57 = vsel %vm1355_vm3, %v2008_v31, %v2024_v3  ;;  %v1326_v56 = vrot.slane %v5049_v58, 7  ;;  %v5052_v31 = vld [vmem:[#allocation18_spill] sm:$0xff] }
 0x191   : > { %v2155_v19 = vsel %vm1321_vm5, %v2114_v25, %v2065_v7  ;;  %1997 = vst.msk [vmem:[%s4189_s16 + $0x160] sm:$0xff] %vm433_vm1, %v1965_v60  ;;  %v2393_v28 = vadd.f32 %v5050_v27, %v2329_v63  ;;  %v2330_v50 = vmul.f32 0.25, %v2040_v57  ;;  %v1342_v11 = vrot.slane %v5051_v44, 7  ;;  %v5056_v25 = vld [vmem:[#allocation13_spill] sm:$0xff]  ;;  %v5059_v44 = vld [vmem:[#allocation26_spill] sm:$0xff] }
 0x192   : > { %v2347_v46 = vmul.f32 0.25, %v2155_v19  ;;  %v1894_v40 = vpop.permute.xlu1 %1893  ;;  %v1407_v32 = vrot.slane %v5049_v58, %v3247_v1  ;;  %v2049_v34 = vsel %vm1355_vm3, %v2017_v43, %v2033_v14  ;;  %v1335_v3 = vrot.slane %v5052_v31, 7  ;;  %v2524_v0 = vpop.permute.xlu0 %2523  ;;  %v5054_v14 = vld [vmem:[#allocation12_spill] sm:$0xff] }
 0x193   : > { %v1351_v61 = vrot.slane %v5053_v53, 7  ;;  %v1966_v2 = vsel %vm760_vm2, %v1742_v6, %v1894_v40  ;;  %v1375_v51 = vsel %vm1355_vm3, %v1342_v11, %v1326_v56  ;;  %v2617_v8 = vsel %vm760_vm2, %v2393_v28, %v2524_v0  ;;  %v5057_v6 = vld [vmem:[#allocation23_spill] sm:$0xff] }
 0x194   : > { %1998 = vst.msk [vmem:[%s4189_s16 + $0x168] sm:$0xff] %vm433_vm1, %v1966_v2  ;;  %v1462_v22 = vsel %vm1321_vm5, %v1407_v32, %v1375_v51  ;;  %2873 = vst.msk [vmem:[%s4189_s16 + $0x30] sm:$0xff] %vm433_vm1, %v2617_v8  ;;  %v2394_v21 = vadd.f32 %v5054_v14, %v2330_v50  ;;  %v2348_v26 = vmul.f32 0.25, %v2049_v34  ;;  %v1443_v29 = vrot.slane %v5052_v31, %v3247_v1  ;;  %v5060_v40 = vld [vmem:[#allocation27_spill] sm:$0xff]  ;;  %v5061_v34 = vld [vmem:[#allocation17_spill] sm:$0xff] }
 0x195   : > { %v1384_v43 = vsel %vm1355_vm3, %v1351_v61, %v1335_v3  ;;  %v2009_v18 = vrot.slane %v5055_v41, 7  ;;  %v2411_v24 = vadd.f32 %v5056_v25, %v2347_v46  ;;  %v1661_v63 = vmul.f32 0.25, %v1462_v22  ;;  %v5064_v25 = vld [vmem:[#allocation31_spill] sm:$0xff] }
 0x196   : > { %v2526_v9 = vpop.permute.xlu1 %2525  ;;  %v1359_v15 = vsel %vm1355_vm3, %v1326_v56, %v1342_v11  ;;  %v2025_v7 = vrot.slane %v5057_v6, 7  ;;  %v1480_v57 = vsel %vm1321_vm5, %v1443_v29, %v1384_v43  ;;  %v2082_v58 = vrot.slane %v5055_v41, %v3247_v1  ;;  %v5058_v56 = vld [vmem:[#allocation16_spill] sm:$0xff] }
 0x197   : > { %v2560_v60 = vpop.permute.xlu0 %2559  ;;  %v2618_v19 = vsel %vm760_vm2, %v2394_v21, %v2526_v9  ;;  %v2412_v46 = vadd.f32 %v5058_v56, %v2348_v26  ;;  %v1662_v50 = vmul.f32 0.25, %v1359_v15  ;;  %v2018_v11 = vrot.slane %v5059_v44, 7  ;;  %v5062_v26 = vld [vmem:[#allocation30_spill] sm:$0xff]  ;;  %v5065_v9 = vld [vmem:[#allocation21_spill] sm:$0xff] }
 0x198   : > { %v2635_v27 = vsel %vm760_vm2, %v2411_v24, %v2560_v60  ;;  %2874 = vst.msk [vmem:[%s4189_s16 + $0x38] sm:$0xff] %vm433_vm1, %v2618_v19  ;;  %v2057_v28 = vsel %vm1355_vm3, %v2025_v7, %v2009_v18  ;;  %v2034_v32 = vrot.slane %v5060_v40, 7  ;;  %v1725_v31 = vadd.f32 %v5061_v34, %v1661_v63 }
 0x199   : > { %2891 = vst.msk [vmem:[%s4189_s16 + $0x150] sm:$0xff] %vm433_vm1, %v2635_v27  ;;  %v1679_v0 = vmul.f32 0.25, %v1480_v57  ;;  %v1368_v2 = vsel %vm1355_vm3, %v1335_v3, %v1351_v61  ;;  %v2139_v22 = vsel %vm1321_vm5, %v2082_v58, %v2057_v28  ;;  %v2118_v43 = vrot.slane %v5059_v44, %v3247_v1  ;;  %v5063_v3 = vld [vmem:[#allocation20_spill] sm:$0xff] }
 0x19a   : > { %v2562_v53 = vpop.permute.xlu1 %2561  ;;  %v2066_v21 = vsel %vm1355_vm3, %v2034_v32, %v2018_v11  ;;  %v1327_v29 = vrot.slane %v5062_v26, 7  ;;  %v1726_v61 = vadd.f32 %v5063_v3, %v1662_v50  ;;  %v1680_v41 = vmul.f32 0.25, %v1368_v2  ;;  %v5068_v44 = vld [vmem:[#allocation24_spill] sm:$0xff]  ;;  %v5070_v3 = vld [vmem:[#allocation38_spill] sm:$0xff] }
 0x19b   : > { %v1860_v51 = vpop.permute.xlu0 %1859  ;;  %v2636_v8 = vsel %vm760_vm2, %v2412_v46, %v2562_v53  ;;  %v1343_v24 = vrot.slane %v5064_v25, 7  ;;  %v1743_v63 = vadd.f32 %v5065_v9, %v1679_v0  ;;  %v2331_v6 = vmul.f32 0.25, %v2139_v22  ;;  %v5066_v46 = vld [vmem:[#allocation34_spill] sm:$0xff] }
 0x19c   : > { %v1949_v14 = vsel %vm760_vm2, %v1725_v31, %v1860_v51  ;;  %2892 = vst.msk [vmem:[%s4189_s16 + $0x158] sm:$0xff] %vm433_vm1, %v2636_v8  ;;  %v2041_v60 = vsel %vm1355_vm3, %v2009_v18, %v2025_v7  ;;  %v2157_v58 = vsel %vm1321_vm5, %v2118_v43, %v2066_v21  ;;  %v1411_v27 = vrot.slane %v5062_v26, %v3247_v1  ;;  %v5067_v18 = vld [vmem:[#allocation35_spill] sm:$0xff]  ;;  %v5069_v31 = vld [vmem:[#allocation25_spill] sm:$0xff] }
 0x19d   : > { %1981 = vst.msk [vmem:[%s4189_s16 + $0x60] sm:$0xff] %vm433_vm1, %v1949_v14  ;;  %v1376_v56 = vsel %vm1355_vm3, %v1343_v24, %v1327_v29  ;;  %v1336_v50 = vrot.slane %v5066_v46, 7  ;;  %v1352_v7 = vrot.slane %v5067_v18, 7  ;;  %v1744_v40 = vadd.f32 %v5068_v44, %v1680_v41  ;;  %v5072_v41 = vld [vmem:[#allocation28_spill] sm:$0xff]  ;;  %v5074_v18 = vld [vmem:[#allocation42_spill] sm:$0xff] }
 0x19e   : > { %v1862_v15 = vpop.permute.xlu1 %1861  ;;  %v2332_v34 = vmul.f32 0.25, %v2041_v60  ;;  %v2395_v53 = vadd.f32 %v5069_v31, %v2331_v6  ;;  %v2349_v2 = vmul.f32 0.25, %v2157_v58  ;;  %v2050_v51 = vsel %vm1355_vm3, %v2018_v11, %v2034_v32  ;;  %v5071_v11 = vld [vmem:[#allocation39_spill] sm:$0xff] }
 0x19f   : > { %v1896_v19 = vpop.permute.xlu0 %1895  ;;  %v1950_v57 = vsel %vm760_vm2, %v1726_v61, %v1862_v15  ;;  %v1464_v43 = vsel %vm1321_vm5, %v1411_v27, %v1376_v56  ;;  %v1447_v14 = vrot.slane %v5066_v46, %v3247_v1  ;;  %v1385_v26 = vsel %vm1355_vm3, %v1352_v7, %v1336_v50 }
 0x1a0   : > { %v1967_v28 = vsel %vm760_vm2, %v1743_v63, %v1896_v19  ;;  %1982 = vst.msk [vmem:[%s4189_s16 + $0x68] sm:$0xff] %vm433_vm1, %v1950_v57  ;;  %v2010_v61 = vrot.slane %v5070_v3, 7  ;;  %v2026_v32 = vrot.slane %v5071_v11, 7  ;;  %v2396_v25 = vadd.f32 %v5072_v41, %v2332_v34  ;;  %v5073_v63 = vld [vmem:[#allocation29_spill] sm:$0xff]  ;;  %v5078_v11 = vld [vmem:[#allocation46_spill] sm:$0xff] }
 0x1a1   : > { %1999 = vst.msk [vmem:[%s4189_s16 + $0x180] sm:$0xff] %vm433_vm1, %v1967_v28  ;;  %v2350_v9 = vmul.f32 0.25, %v2050_v51  ;;  %v2413_v15 = vadd.f32 %v5073_v63, %v2349_v2  ;;  %v1663_v60 = vmul.f32 0.25, %v1464_v43  ;;  %v1360_v19 = vsel %vm1355_vm3, %v1327_v29, %v1343_v24  ;;  %v5075_v29 = vld [vmem:[#allocation43_spill] sm:$0xff] }
 0x1a2   : > { %v1898_v0 = vpop.permute.xlu1 %1897  ;;  %v1482_v27 = vsel %vm1321_vm5, %v1447_v14, %v1385_v26  ;;  %v2086_v28 = vrot.slane %v5070_v3, %v3247_v1  ;;  %v2058_v46 = vsel %vm1355_vm3, %v2026_v32, %v2010_v61  ;;  %v2019_v44 = vrot.slane %v5074_v18, 7 }
 0x1a3   : > { %v2528_v8 = vpop.permute.xlu0 %2527  ;;  %v1968_v22 = vsel %vm760_vm2, %v1744_v40, %v1898_v0  ;;  %v2035_v24 = vrot.slane %v5075_v29, 7  ;;  %v5076_v40 = vld [vmem:[#allocation32_spill] sm:$0xff]  ;;  %v1664_v31 = vmul.f32 0.25, %v1360_v19  ;;  %v1681_v51 = vmul.f32 0.25, %v1482_v27  ;;  %v5082_v29 = vld [vmem:[#allocation50_spill] sm:$0xff] }
 0x1a4   : > { %v2619_v21 = vsel %vm760_vm2, %v2395_v53, %v2528_v8  ;;  %2000 = vst.msk [vmem:[%s4189_s16 + $0x188] sm:$0xff] %vm433_vm1, %v1968_v22  ;;  %v2414_v34 = vadd.f32 %v5076_v40, %v2350_v9  ;;  %v5077_v53 = vld [vmem:[#allocation33_spill] sm:$0xff]  ;;  %v1369_v8 = vsel %vm1355_vm3, %v1336_v50, %v1352_v7  ;;  %v2141_v14 = vsel %vm1321_vm5, %v2086_v28, %v2058_v46  ;;  %v5079_v50 = vld [vmem:[#allocation47_spill] sm:$0xff] }
 0x1a5   : > { %2875 = vst.msk [vmem:[%s4189_s16 + $0x50] sm:$0xff] %vm433_vm1, %v2619_v21  ;;  %v1727_v0 = vadd.f32 %v5077_v53, %v1663_v60  ;;  %v2122_v21 = vrot.slane %v5074_v18, %v3247_v1  ;;  %v2067_v3 = vsel %vm1355_vm3, %v2035_v24, %v2019_v44  ;;  %v1328_v41 = vrot.slane %v5078_v11, 7 }
 0x1a6   : > { %v2530_v6 = vpop.permute.xlu1 %2529  ;;  %v1344_v7 = vrot.slane %v5079_v50, 7  ;;  %v1682_v63 = vmul.f32 0.25, %v1369_v8  ;;  %v2333_v19 = vmul.f32 0.25, %v2141_v14  ;;  %v1337_v40 = vrot.slane %v5082_v29, 7  ;;  %v5086_v50 = vld [vmem:[#allocation54_spill] sm:$0xff] }
 0x1a7   : > { %v2564_v57 = vpop.permute.xlu0 %2563  ;;  %v2620_v58 = vsel %vm760_vm2, %v2396_v25, %v2530_v6  ;;  %v5080_v25 = vld [vmem:[#allocation36_spill] sm:$0xff]  ;;  %v2159_v28 = vsel %vm1321_vm5, %v2122_v21, %v2067_v3 }
 0x1a8   : > { %v2637_v56 = vsel %vm760_vm2, %v2413_v15, %v2564_v57  ;;  %2876 = vst.msk [vmem:[%s4189_s16 + $0x58] sm:$0xff] %vm433_vm1, %v2620_v58  ;;  %v1728_v9 = vadd.f32 %v5080_v25, %v1664_v31  ;;  %v5081_v15 = vld [vmem:[#allocation37_spill] sm:$0xff]  ;;  %v2042_v57 = vsel %vm1355_vm3, %v2010_v61, %v2026_v32  ;;  %v1377_v18 = vsel %vm1355_vm3, %v1344_v7, %v1328_v41  ;;  %v5083_v61 = vld [vmem:[#allocation51_spill] sm:$0xff] }
 0x1a9   : > { %2893 = vst.msk [vmem:[%s4189_s16 + $0x170] sm:$0xff] %vm433_vm1, %v2637_v56  ;;  %v1745_v6 = vadd.f32 %v5081_v15, %v1681_v51  ;;  %v1415_v56 = vrot.slane %v5078_v11, %v3247_v1  ;;  %v1353_v32 = vrot.slane %v5083_v61, 7  ;;  %v2334_v53 = vmul.f32 0.25, %v2042_v57  ;;  %v5090_v61 = vld [vmem:[#allocation58_spill] sm:$0xff] }
 0x1aa   : > { %v2566_v2 = vpop.permute.xlu1 %2565  ;;  %v2351_v8 = vmul.f32 0.25, %v2159_v28  ;;  %v2011_v25 = vrot.slane %v5086_v50, 7 }
 0x1ab   : > { %v1864_v22 = vpop.permute.xlu0 %1863  ;;  %v2638_v43 = vsel %vm760_vm2, %v2414_v34, %v2566_v2  ;;  %v5084_v34 = vld [vmem:[#allocation40_spill] sm:$0xff]  ;;  %v1466_v21 = vsel %vm1321_vm5, %v1415_v56, %v1377_v18  ;;  %v1386_v11 = vsel %vm1355_vm3, %v1353_v32, %v1337_v40 }
 0x1ac   : > { %v1951_v26 = vsel %vm760_vm2, %v1727_v0, %v1864_v22  ;;  %2894 = vst.msk [vmem:[%s4189_s16 + $0x178] sm:$0xff] %vm433_vm1, %v2638_v43  ;;  %v1746_v31 = vadd.f32 %v5084_v34, %v1682_v63  ;;  %v5085_v0 = vld [vmem:[#allocation41_spill] sm:$0xff]  ;;  %v2051_v22 = vsel %vm1355_vm3, %v2019_v44, %v2035_v24  ;;  %v5087_v44 = vld [vmem:[#allocation55_spill] sm:$0xff]  ;;  %v1665_v57 = vmul.f32 0.25, %v1466_v21 }
 0x1ad   : > { %1983 = vst.msk [vmem:[%s4189_s16 + $0x80] sm:$0xff] %vm433_vm1, %v1951_v26  ;;  %v2397_v2 = vadd.f32 %v5085_v0, %v2333_v19  ;;  %v1451_v26 = vrot.slane %v5082_v29, %v3247_v1  ;;  %v2027_v24 = vrot.slane %v5087_v44, 7  ;;  %v2352_v15 = vmul.f32 0.25, %v2051_v22  ;;  %v5094_v44 = vld [vmem:[#allocation62_spill] sm:$0xff] }
 0x1ae   : > { %v1866_v60 = vpop.permute.xlu1 %1865  ;;  %v2020_v34 = vrot.slane %v5090_v61, 7 }
 0x1af   : > { %v1900_v58 = vpop.permute.xlu0 %1899  ;;  %v1952_v27 = vsel %vm760_vm2, %v1728_v9, %v1866_v60  ;;  %v5088_v9 = vld [vmem:[#allocation44_spill] sm:$0xff]  ;;  %v1484_v56 = vsel %vm1321_vm5, %v1451_v26, %v1386_v11  ;;  %v2059_v29 = vsel %vm1355_vm3, %v2027_v24, %v2011_v25 }
 0x1b0   : > { %v1969_v46 = vsel %vm760_vm2, %v1745_v6, %v1900_v58  ;;  %1984 = vst.msk [vmem:[%s4189_s16 + $0x88] sm:$0xff] %vm433_vm1, %v1952_v27  ;;  %v2398_v63 = vadd.f32 %v5088_v9, %v2334_v53  ;;  %v5089_v6 = vld [vmem:[#allocation45_spill] sm:$0xff]  ;;  %v1361_v58 = vsel %vm1355_vm3, %v1328_v41, %v1344_v7  ;;  %v5091_v41 = vld [vmem:[#allocation59_spill] sm:$0xff]  ;;  %v1683_v22 = vmul.f32 0.25, %v1484_v56 }
 0x1b1   : > { %2001 = vst.msk [vmem:[%s4189_s16 + $0x1a0] sm:$0xff] %vm433_vm1, %v1969_v46  ;;  %v2415_v60 = vadd.f32 %v5089_v6, %v2351_v8  ;;  %v2090_v46 = vrot.slane %v5086_v50, %v3247_v1  ;;  %v2036_v7 = vrot.slane %v5091_v41, 7  ;;  %v1666_v0 = vmul.f32 0.25, %v1361_v58  ;;  %v5096_v6 = vld [vmem:[#allocation53_spill] sm:$0xff] }
 0x1b2   : > { %v1902_v51 = vpop.permute.xlu1 %1901  ;;  %v1329_v9 = vrot.slane %v5094_v44, 7  ;;  %v2043_v58 = vsel %vm1355_vm3, %v2011_v25, %v2027_v24  ;;  %v1354_v25 = vrot.slane %v3946_v59, 7  ;;  %v5097_v24 = vld [vmem:[#allocation56_spill] sm:$0xff]  ;;  %v1455_v59 = vrot.slane %v3943_v38, %v3247_v1 }
 0x1b3   : > { %v2532_v43 = vpop.permute.xlu0 %2531  ;;  %v1970_v14 = vsel %vm760_vm2, %v1746_v31, %v1902_v51  ;;  %v5092_v31 = vld [vmem:[#allocation48_spill] sm:$0xff]  ;;  %v2143_v26 = vsel %vm1321_vm5, %v2090_v46, %v2059_v29  ;;  %v2068_v50 = vsel %vm1355_vm3, %v2036_v7, %v2020_v34  ;;  %v1338_v29 = vrot.slane %v3943_v38, 7 }
 0x1b4   : > { %v2621_v3 = vsel %vm760_vm2, %v2397_v2, %v2532_v43  ;;  %2002 = vst.msk [vmem:[%s4189_s16 + $0x1a8] sm:$0xff] %vm433_vm1, %v1970_v14  ;;  %v2416_v53 = vadd.f32 %v5092_v31, %v2352_v15  ;;  %v5093_v2 = vld [vmem:[#allocation49_spill] sm:$0xff]  ;;  %v1370_v43 = vsel %vm1355_vm3, %v1337_v40, %v1353_v32  ;;  %v1345_v40 = vrot.slane %v3916_v13, 7  ;;  %v5095_v32 = vld [vmem:[#allocation52_spill] sm:$0xff] }
 0x1b5   : > { %2877 = vst.msk [vmem:[%s4189_s16 + $0x70] sm:$0xff] %vm433_vm1, %v2621_v3  ;;  %v1729_v51 = vadd.f32 %v5093_v2, %v1665_v57  ;;  %v2126_v3 = vrot.slane %v5090_v61, %v3247_v1  ;;  %v1684_v15 = vmul.f32 0.25, %v1370_v43  ;;  %v2335_v57 = vmul.f32 0.25, %v2143_v26 }
 0x1b6   : > { %v2534_v19 = vpop.permute.xlu1 %2533  ;;  %v1419_v13 = vrot.slane %v5094_v44, %v3247_v1  ;;  %v2336_v41 = vmul.f32 0.25, %v2043_v58  ;;  %v2052_v31 = vsel %vm1355_vm3, %v2020_v34, %v2036_v7  ;;  %v1387_v34 = vsel %vm1355_vm3, %v1354_v25, %v1338_v29  ;;  %v5099_v7 = vld [vmem:[#allocation60_spill] sm:$0xff] }
 0x1b7   : > { %v2568_v27 = vpop.permute.xlu0 %2567  ;;  %v2622_v28 = vsel %vm760_vm2, %v2398_v63, %v2534_v19  ;;  %v1730_v63 = vadd.f32 %v5095_v32, %v1666_v0  ;;  %v2161_v56 = vsel %vm1321_vm5, %v2126_v3, %v2068_v50  ;;  %v1748_v61 = vadd.f32 %v5097_v24, %v1684_v15  ;;  %v5100_v3 = vld [vmem:[#allocation68_spill] sm:$0xff]  ;;  %v5101_v50 = vld [vmem:[#allocation69_spill] sm:$0xff] }
 0x1b8   : > { %v2639_v18 = vsel %vm760_vm2, %v2415_v60, %v2568_v27  ;;  %2878 = vst.msk [vmem:[%s4189_s16 + $0x78] sm:$0xff] %vm433_vm1, %v2622_v28  ;;  %v1747_v60 = vadd.f32 %v5096_v6, %v1683_v22  ;;  %v2400_v26 = vadd.f32 %v5099_v7, %v2336_v41  ;;  %v2028_v44 = vrot.slane %v5101_v50, 7  ;;  %v5102_v32 = vld [vmem:[#allocation61_spill] sm:$0xff]  ;;  %v5105_v24 = vld [vmem:[#allocation72_spill] sm:$0xff] }
 0x1b9   : > { %2895 = vst.msk [vmem:[%s4189_s16 + $0x190] sm:$0xff] %vm433_vm1, %v2639_v18  ;;  %v1378_v18 = vsel %vm1355_vm3, %v1345_v40, %v1329_v9  ;;  %v1362_v6 = vsel %vm1355_vm3, %v1329_v9, %v1345_v40  ;;  %v5106_v41 = vld [vmem:[#allocation64_spill] sm:$0xff]  ;;  %v1323_v7 = vrot.slane %v4031_v17, 7 }
 0x1ba   : > { %v2570_v8 = vpop.permute.xlu1 %2569  ;;  %v1468_v43 = vsel %vm1321_vm5, %v1419_v13, %v1378_v18  ;;  %v1371_v13 = vsel %vm1355_vm3, %v1338_v29, %v1354_v25  ;;  %v1668_v9 = vmul.f32 0.25, %v1362_v6 }
 0x1bb   : > { %v1868_v14 = vpop.permute.xlu0 %1867  ;;  %v2640_v21 = vsel %vm760_vm2, %v2416_v53, %v2570_v8  ;;  %v5098_v53 = vld [vmem:[#allocation57_spill] sm:$0xff]  ;;  %v1667_v15 = vmul.f32 0.25, %v1468_v43 }
 0x1bc   : > { %v1953_v11 = vsel %vm760_vm2, %v1729_v51, %v1868_v14  ;;  %2896 = vst.msk [vmem:[%s4189_s16 + $0x198] sm:$0xff] %vm433_vm1, %v2640_v21  ;;  %v2399_v0 = vadd.f32 %v5098_v53, %v2335_v57  ;;  %v2353_v51 = vmul.f32 0.25, %v2161_v56  ;;  %v2354_v21 = vmul.f32 0.25, %v2052_v31 }
 0x1bd   : > { %1985 = vst.msk [vmem:[%s4189_s16 + $0xa0] sm:$0xff] %vm433_vm1, %v1953_v11  ;;  %v2012_v11 = vrot.slane %v5100_v3, 7  ;;  %v1486_v57 = vsel %vm1321_vm5, %v1455_v59, %v1387_v34  ;;  %v2094_v56 = vrot.slane %v5100_v3, %v3247_v1  ;;  %v1731_v31 = vadd.f32 %v5106_v41, %v1667_v15  ;;  %v5107_v59 = vld [vmem:[#allocation65_spill] sm:$0xff]  ;;  %v5113_v41 = vld [vmem:[#allocation74_spill] sm:$0xff] }
 0x1be   : > { %v1870_v19 = vpop.permute.xlu1 %1869  ;;  %v2417_v38 = vadd.f32 %v5102_v32, %v2353_v51  ;;  %v1339_v34 = vrot.slane %v4034_v54, 7 }
 0x1bf   : > { %v1904_v27 = vpop.permute.xlu0 %1903  ;;  %v1954_v28 = vsel %vm760_vm2, %v1730_v63, %v1870_v19  ;;  %v2060_v40 = vsel %vm1355_vm3, %v2028_v44, %v2012_v11  ;;  %v2044_v43 = vsel %vm1355_vm3, %v2012_v11, %v2028_v44  ;;  %v5109_v11 = vld [vmem:[#allocation67_spill] sm:$0xff] }
 0x1c0   : > { %v1971_v46 = vsel %vm760_vm2, %v1747_v60, %v1904_v27  ;;  %1986 = vst.msk [vmem:[%s4189_s16 + $0xa8] sm:$0xff] %vm433_vm1, %v1954_v28  ;;  %v5103_v27 = vld [vmem:[#allocation63_spill] sm:$0xff]  ;;  %v2145_v25 = vsel %vm1321_vm5, %v2094_v56, %v2060_v40  ;;  %v2338_v15 = vmul.f32 0.25, %v2044_v43  ;;  %v5111_v56 = vld [vmem:[#allocation78_spill] sm:$0xff] }
 0x1c1   : > { %2003 = vst.msk [vmem:[%s4189_s16 + $0x1c0] sm:$0xff] %vm433_vm1, %v1971_v46  ;;  %v2418_v28 = vadd.f32 %v5103_v27, %v2354_v21  ;;  %v5104_v46 = vld [vmem:[#allocation70_spill] sm:$0xff]  ;;  %v5110_v27 = vld [vmem:[#allocation77_spill] sm:$0xff]  ;;  %v5112_v40 = vld [vmem:[#allocation71_spill] sm:$0xff] }
 0x1c2   : > { %v1906_v2 = vpop.permute.xlu1 %1905  ;;  %v2021_v18 = vrot.slane %v5104_v46, 7 }
 0x1c3   : > { %v2536_v8 = vpop.permute.xlu0 %2535  ;;  %v1972_v22 = vsel %vm760_vm2, %v1748_v61, %v1906_v2  ;;  %v2037_v61 = vrot.slane %v5105_v24, 7 }
 0x1c4   : > { %v2623_v14 = vsel %vm760_vm2, %v2399_v0, %v2536_v8  ;;  %2004 = vst.msk [vmem:[%s4189_s16 + $0x1c8] sm:$0xff] %vm433_vm1, %v1972_v22  ;;  %v1685_v0 = vmul.f32 0.25, %v1486_v57  ;;  %v1686_v8 = vmul.f32 0.25, %v1371_v13  ;;  %v2130_v22 = vrot.slane %v5104_v46, %v3247_v1 }
 0x1c5   : > { %2879 = vst.msk [vmem:[%s4189_s16 + $0x90] sm:$0xff] %vm433_vm1, %v2623_v14  ;;  %v1732_v14 = vadd.f32 %v5107_v59, %v1668_v9  ;;  %v2069_v21 = vsel %vm1355_vm3, %v2037_v61, %v2021_v18  ;;  %v2053_v57 = vsel %vm1355_vm3, %v2021_v18, %v2037_v61  ;;  %v1346_v13 = vrot.slane %v5111_v56, 7 }
 0x1c6   : > { %v2538_v63 = vpop.permute.xlu1 %2537  ;;  %v1750_v44 = vadd.f32 %v5109_v11, %v1686_v8 }
 0x1c7   : > { %v2572_v60 = vpop.permute.xlu0 %2571  ;;  %v2624_v19 = vsel %vm760_vm2, %v2400_v26, %v2538_v63  ;;  %v5108_v26 = vld [vmem:[#allocation66_spill] sm:$0xff]  ;;  %v2337_v63 = vmul.f32 0.25, %v2145_v25 }
 0x1c8   : > { %v2641_v58 = vsel %vm760_vm2, %v2417_v38, %v2572_v60  ;;  %2880 = vst.msk [vmem:[%s4189_s16 + $0x98] sm:$0xff] %vm433_vm1, %v2624_v19  ;;  %v1749_v3 = vadd.f32 %v5108_v26, %v1685_v0  ;;  %v2163_v60 = vsel %vm1321_vm5, %v2130_v22, %v2069_v21  ;;  %v1395_v19 = vrot.slane %v4031_v17, %v3247_v1  ;;  %v5115_v22 = vld [vmem:[#allocation82_spill] sm:$0xff]  ;;  %v5120_v17 = vld [vmem:[#allocation84_spill] sm:$0xff] }
 0x1c9   : > { %2897 = vst.msk [vmem:[%s4189_s16 + $0x1b0] sm:$0xff] %vm433_vm1, %v2641_v58  ;;  %v1372_v58 = vsel %vm1355_vm3, %v1339_v34, %v1323_v7  ;;  %v2401_v46 = vadd.f32 %v5112_v40, %v2337_v63  ;;  %v2355_v18 = vmul.f32 0.25, %v2163_v60  ;;  %v2356_v0 = vmul.f32 0.25, %v2053_v57 }
 0x1ca   : > { %v2574_v53 = vpop.permute.xlu1 %2573  ;;  %v2029_v43 = vrot.slane %v5115_v22, 7 }
 0x1cb   : > { %v1872_v2 = vpop.permute.xlu0 %1871  ;;  %v2642_v51 = vsel %vm760_vm2, %v2418_v28, %v2574_v53  ;;  %v1330_v28 = vrot.slane %v5110_v27, 7  ;;  %v1456_v53 = vsel %vm1321_vm5, %v1395_v19, %v1372_v58  ;;  %v5118_v19 = vld [vmem:[#allocation76_spill] sm:$0xff] }
 0x1cc   : > { %v1955_v29 = vsel %vm760_vm2, %v1731_v31, %v1872_v2  ;;  %2898 = vst.msk [vmem:[%s4189_s16 + $0x1b8] sm:$0xff] %vm433_vm1, %v2642_v51  ;;  %v2402_v31 = vadd.f32 %v5113_v41, %v2338_v15  ;;  %v1423_v2 = vrot.slane %v5110_v27, %v3247_v1 }
 0x1cd   : > { %1987 = vst.msk [vmem:[%s4189_s16 + $0xc0] sm:$0xff] %vm433_vm1, %v1955_v29  ;;  %v1379_v8 = vsel %vm1355_vm3, %v1346_v13, %v1330_v28  ;;  %v5114_v29 = vld [vmem:[#allocation81_spill] sm:$0xff] }
 0x1ce   : > { %v1874_v50 = vpop.permute.xlu1 %1873  ;;  %v2013_v25 = vrot.slane %v5114_v29, 7  ;;  %v2098_v63 = vrot.slane %v5114_v29, %v3247_v1  ;;  %v1348_v29 = vrot.slane %v4135_v4, 7 }
 0x1cf   : > { %v1908_v32 = vpop.permute.xlu0 %1907  ;;  %v1956_v38 = vsel %vm760_vm2, %v1732_v14, %v1874_v50  ;;  %v5116_v14 = vld [vmem:[#allocation73_spill] sm:$0xff] }
 0x1d0   : > { %v1973_v6 = vsel %vm760_vm2, %v1749_v3, %v1908_v32  ;;  %1988 = vst.msk [vmem:[%s4189_s16 + $0xc8] sm:$0xff] %vm433_vm1, %v1956_v38  ;;  %v2419_v21 = vadd.f32 %v5116_v14, %v2355_v18  ;;  %v1655_v3 = vmul.f32 0.25, %v1456_v53  ;;  %v1470_v32 = vsel %vm1321_vm5, %v1423_v2, %v1379_v8  ;;  %v5119_v18 = vld [vmem:[#allocation80_spill] sm:$0xff] }
 0x1d1   : > { %2005 = vst.msk [vmem:[%s4189_s16 + $0x1e0] sm:$0xff] %vm433_vm1, %v1973_v6  ;;  %v1363_v38 = vsel %vm1355_vm3, %v1330_v28, %v1346_v13  ;;  %v2061_v6 = vsel %vm1355_vm3, %v2029_v43, %v2013_v25  ;;  %v1669_v27 = vmul.f32 0.25, %v1470_v32  ;;  %v1332_v8 = vrot.slane %v3525_v62, 7  ;;  %v5122_v32 = vld [vmem:[#allocation79_spill] sm:$0xff] }
 0x1d2   : > { %v1910_v9 = vpop.permute.xlu1 %1909  ;;  %v1719_v57 = vadd.f32 %v5118_v19, %v1655_v3  ;;  %v1670_v28 = vmul.f32 0.25, %v1363_v38  ;;  %v2147_v13 = vsel %vm1321_vm5, %v2098_v63, %v2061_v6  ;;  %v2014_v38 = vrot.slane %v5122_v32, 7 }
 0x1d3   : > { %v1974_v24 = vsel %vm760_vm2, %v1750_v44, %v1910_v9  ;;  %v2540_v61 = vpop.permute.xlu0 %2539  ;;  %v5117_v44 = vld [vmem:[#allocation75_spill] sm:$0xff]  ;;  %v2045_v9 = vsel %vm1355_vm3, %v2013_v25, %v2029_v43  ;;  %v2030_v63 = vrot.slane %v4138_v33, 7 }
 0x1d4   : > { %2006 = vst.msk [vmem:[%s4189_s16 + $0x1e8] sm:$0xff] %vm433_vm1, %v1974_v24  ;;  %v2625_v51 = vsel %vm760_vm2, %v2401_v46, %v2540_v61  ;;  %v2420_v15 = vadd.f32 %v5117_v44, %v2356_v0  ;;  %v1331_v46 = vrot.slane %v4129_v23, 7  ;;  %v1347_v24 = vrot.slane %v4132_v45, 7  ;;  %v5123_v44 = vld [vmem:[#allocation83_spill] sm:$0xff] }
 0x1d5   : > { %2881 = vst.msk [vmem:[%s4189_s16 + $0xb0] sm:$0xff] %vm433_vm1, %v2625_v51  ;;  %v1733_v61 = vadd.f32 %v5119_v18, %v1669_v27  ;;  %v1734_v41 = vadd.f32 %v4071_v36, %v1670_v28  ;;  %v2340_v53 = vmul.f32 0.25, %v2045_v9  ;;  %v1356_v51 = vsel %vm1355_vm3, %v1323_v7, %v1339_v34 }
 0x1d6   : > { %v2542_v59 = vpop.permute.xlu1 %2541  ;;  %v1427_v45 = vrot.slane %v4129_v23, %v3247_v1  ;;  %v1380_v22 = vsel %vm1355_vm3, %v1347_v24, %v1331_v46  ;;  %v5121_v23 = vld [vmem:[#allocation85_spill] sm:$0xff]  ;;  %v1656_v7 = vmul.f32 0.25, %v1356_v51  ;;  %v1364_v4 = vsel %vm1355_vm3, %v1331_v46, %v1347_v24 }
 0x1d7   : > { %v2626_v26 = vsel %vm760_vm2, %v2402_v31, %v2542_v59  ;;  %v2576_v50 = vpop.permute.xlu0 %2575  ;;  %v2339_v31 = vmul.f32 0.25, %v2147_v13  ;;  %v2404_v34 = vadd.f32 %v5121_v23, %v2340_v53  ;;  %v2015_v27 = vrot.slane %v4222_v5, 7 }
 0x1d8   : > { %2882 = vst.msk [vmem:[%s4189_s16 + $0xb8] sm:$0xff] %vm433_vm1, %v2626_v26  ;;  %v2643_v11 = vsel %vm760_vm2, %v2419_v21, %v2576_v50  ;;  %v1472_v14 = vsel %vm1321_vm5, %v1427_v45, %v1380_v22  ;;  %v1381_v21 = vsel %vm1355_vm3, %v1348_v29, %v1332_v8  ;;  %v1431_v26 = vrot.slane %v3525_v62, %v3247_v1 }
 0x1d9   : > { %2899 = vst.msk [vmem:[%s4189_s16 + $0x1d0] sm:$0xff] %vm433_vm1, %v2643_v11  ;;  %v2403_v54 = vadd.f32 %v5120_v17, %v2339_v31  ;;  %v1672_v11 = vmul.f32 0.25, %v1364_v4  ;;  %v1671_v6 = vmul.f32 0.25, %v1472_v14  ;;  %v1365_v62 = vsel %vm1355_vm3, %v1332_v8, %v1348_v29 }
 0x1da   : > { %v2578_v60 = vpop.permute.xlu1 %2577  ;;  %v1474_v19 = vsel %vm1321_vm5, %v1431_v26, %v1381_v21  ;;  %v2031_v28 = vrot.slane %v4228_v48, 7  ;;  %v1674_v13 = vmul.f32 0.25, %v1365_v62  ;;  %v2046_v24 = vsel %vm1355_vm3, %v2014_v38, %v2030_v63 }
 0x1db   : > { %v2644_v58 = vsel %vm760_vm2, %v2420_v15, %v2578_v60  ;;  %v1848_v56 = vpop.permute.xlu0 %1847  ;;  %v1720_v15 = vadd.f32 %v5123_v44, %v1656_v7  ;;  %v1673_v46 = vmul.f32 0.25, %v1474_v19  ;;  %v2106_v48 = vrot.slane %v4222_v5, %v3247_v1 }
 0x1dc   : > { %2900 = vst.msk [vmem:[%s4189_s16 + $0x1d8] sm:$0xff] %vm433_vm1, %v2644_v58  ;;  %v1943_v40 = vsel %vm760_vm2, %v1719_v57, %v1848_v56  ;;  %v2102_v57 = vrot.slane %v5122_v32, %v3247_v1  ;;  %v2062_v58 = vsel %vm1355_vm3, %v2030_v63, %v2014_v38  ;;  %v1736_v56 = vadd.f32 %v4155_v30, %v1672_v11 }
 0x1dd   : > { %1975 = vst.msk [vmem:[%s4189_s16] sm:$0xff] %vm433_vm1, %v1943_v40  ;;  %v1735_v40 = vadd.f32 %v4160_v47, %v1671_v6  ;;  %v2063_v47 = vsel %vm1355_vm3, %v2031_v28, %v2015_v27  ;;  %v2022_v31 = vrot.slane %v3952_v39, 7  ;;  %v2038_v53 = vrot.slane %v4257_v37, 7 }
 0x1de   : > { %v1737_v5 = vadd.f32 %v4125_v16, %v1673_v46  ;;  %v2047_v8 = vsel %vm1355_vm3, %v2015_v27, %v2031_v28  ;;  %v2134_v37 = vrot.slane %v3952_v39, %v3247_v1 }
 0x1df   : > { %v1876_v0 = vpop.permute.xlu0 %1875  ;;  %v1878_v2 = vpop.permute.xlu1 %1877  ;;  %v2070_v16 = vsel %vm1355_vm3, %v2038_v53, %v2022_v31  ;;  %v2344_v17 = vmul.f32 0.25, %v2047_v8  ;;  %v2054_v1 = vsel %vm1355_vm3, %v2022_v31, %v2038_v53 }
 0x1e0   : > { %v1957_v36 = vsel %vm760_vm2, %v1733_v61, %v1876_v0  ;;  %v1958_v25 = vsel %vm760_vm2, %v1734_v41, %v1878_v2  ;;  %v2149_v41 = vsel %vm1321_vm5, %v2102_v57, %v2062_v58  ;;  %v1738_v0 = vadd.f32 %v4166_v10, %v1674_v13 }
 0x1e1   : > { %1989 = vst.msk [vmem:[%s4189_s16 + $0xe0] sm:$0xff] %vm433_vm1, %v1957_v36  ;;  %1990 = vst.msk [vmem:[%s4189_s16 + $0xe8] sm:$0xff] %vm433_vm1, %v1958_v25  ;;  %v2342_v2 = vmul.f32 0.25, %v2046_v24  ;;  %v2341_v45 = vmul.f32 0.25, %v2149_v41  ;;  %v2151_v25 = vsel %vm1321_vm5, %v2106_v48, %v2063_v47  ;;  %v2165_v4 = vsel %vm1321_vm5, %v2134_v37, %v2070_v16 }
 0x1e2   : > { %v2357_v21 = vmul.f32 0.25, %v2165_v4 }
 0x1e3   : > { %v2544_v43 = vpop.permute.xlu0 %2543  ;;  %v2546_v59 = vpop.permute.xlu1 %2545  ;;  %v2406_v22 = vadd.f32 %v4196_v49, %v2342_v2  ;;  %v2405_v23 = vadd.f32 %v4142_v12, %v2341_v45  ;;  %v2408_v12 = vadd.f32 %v4248_v42, %v2344_v17 }
 0x1e4   : > { %v2627_v3 = vsel %vm760_vm2, %v2403_v54, %v2544_v43  ;;  %v2628_v50 = vsel %vm760_vm2, %v2404_v34, %v2546_v59  ;;  %v2343_v34 = vmul.f32 0.25, %v2151_v25  ;;  %v2358_v43 = vmul.f32 0.25, %v2054_v1 }
 0x1e5   : > { %2883 = vst.msk [vmem:[%s4189_s16 + $0xd0] sm:$0xff] %vm433_vm1, %v2627_v3  ;;  %2884 = vst.msk [vmem:[%s4189_s16 + $0xd8] sm:$0xff] %vm433_vm1, %v2628_v50  ;;  %v2421_v42 = vadd.f32 %v4284_v35, %v2357_v21 }
 0x1e6   : > { %v2407_v14 = vadd.f32 %v4241_v20, %v2343_v34  ;;  %v2422_v50 = vadd.f32 %v4281_v52, %v2358_v43 }
 0x1e7   : > { %v1850_v60 = vpop.permute.xlu0 %1849 }
 0x1e8   : > { %v1944_v33 = vsel %vm760_vm2, %v1720_v15, %v1850_v60 }
 0x1e9   : > { %1976 = vst.msk [vmem:[%s4189_s16 + $0x8] sm:$0xff] %vm433_vm1, %v1944_v33 }
 0x1ea   : > { %v1882_v9 = vpop.permute.xlu1 %1881 }
 0x1eb   : > { %v1960_v18 = vsel %vm760_vm2, %v1736_v56, %v1882_v9  ;;  %v1880_v61 = vpop.permute.xlu0 %1879 }
 0x1ec   : > { %1992 = vst.msk [vmem:[%s4189_s16 + $0x108] sm:$0xff] %vm433_vm1, %v1960_v18  ;;  %v1959_v30 = vsel %vm760_vm2, %v1735_v40, %v1880_v61 }
 0x1ed   : > { %1991 = vst.msk [vmem:[%s4189_s16 + $0x100] sm:$0xff] %vm433_vm1, %v1959_v30 }
 0x1ee   : > { %v1886_v51 = vpop.permute.xlu1 %1885 }
 0x1ef   : > { %v1962_v29 = vsel %vm760_vm2, %v1738_v0, %v1886_v51  ;;  %v1884_v36 = vpop.permute.xlu0 %1883 }
 0x1f0   : > { %1994 = vst.msk [vmem:[%s4189_s16 + $0x128] sm:$0xff] %vm433_vm1, %v1962_v29  ;;  %v1961_v10 = vsel %vm760_vm2, %v1737_v5, %v1884_v36 }
 0x1f1   : > { %1993 = vst.msk [vmem:[%s4189_s16 + $0x120] sm:$0xff] %vm433_vm1, %v1961_v10 }
 0x1f2   : > { %v2550_v54 = vpop.permute.xlu1 %2549 }
 0x1f3   : > { %v2630_v39 = vsel %vm760_vm2, %v2406_v22, %v2550_v54  ;;  %v2548_v7 = vpop.permute.xlu0 %2547 }
 0x1f4   : > { %2886 = vst.msk [vmem:[%s4189_s16 + $0xf8] sm:$0xff] %vm433_vm1, %v2630_v39  ;;  %v2629_v49 = vsel %vm760_vm2, %v2405_v23, %v2548_v7 }
 0x1f5   : > { %2885 = vst.msk [vmem:[%s4189_s16 + $0xf0] sm:$0xff] %vm433_vm1, %v2629_v49 }
 0x1f7   : > { %v2554_v59 = vpop.permute.xlu1 %2553  ;;  %v2552_v3 = vpop.permute.xlu0 %2551 }
 0x1f8   : > { %v2632_v26 = vsel %vm760_vm2, %v2408_v12, %v2554_v59  ;;  %v2631_v55 = vsel %vm760_vm2, %v2407_v14, %v2552_v3 }
 0x1f9   : > { %2888 = vst.msk [vmem:[%s4189_s16 + $0x118] sm:$0xff] %vm433_vm1, %v2632_v26  ;;  %2887 = vst.msk [vmem:[%s4189_s16 + $0x110] sm:$0xff] %vm433_vm1, %v2631_v55 }
 0x1fb   : > { %v2580_v63 = vpop.permute.xlu0 %2579 }
 0x1fc   : > { %v2582_v32 = vpop.permute.xlu1 %2581  ;;  %v2645_v20 = vsel %vm760_vm2, %v2421_v42, %v2580_v63 }
 0x1fd   : > { %v2646_v38 = vsel %vm760_vm2, %v2422_v50, %v2582_v32  ;;  %2901 = vst.msk [vmem:[%s4189_s16 + $0x1f0] sm:$0xff] %vm433_vm1, %v2645_v20 }
 0x1fe   : > { %2902 = vst.msk [vmem:[%s4189_s16 + $0x1f8] sm:$0xff] %vm433_vm1, %v2646_v38 }
 0x1ff PF: > { %s15_s20 = sadd.s32 1, %s3060_s20   ;;  %s5124_s18 = smov %s3056_s19 }
 0x200   : > { %p12_p5 = scmp.ge.s32.totalorder %s15_s20, 4   ;;  %s5125_s19 = smov %s5127_s21 }
 0x202   :  { %14 = sbr.rel (!%p12_p5) target bundleno = 2 (0x2), region = 80 }

</bundles_post_ra>
